<compile_context>
chip_gen: v6e
topology: v6e:2x2x1
jax: 0.10.0
libtpu: 0.0.40
codegen_flags: <defaults>
</compile_context>

<pallas_src>
import numpy as np

import jax
import jax.numpy as jnp
from jax.experimental import pallas as pl
from jax.experimental.pallas import tpu as pltpu

EPS = 1e-5          # torch.nn.InstanceNorm2d default eps
NEG_SLOPE = 0.2     # F.leaky_relu(x, 0.2)


# --------------------------------- kernel ------------------------------------

def _make_kernel(*, H, W, K, P, NB, Cin, Cout, learned_shortcut):
    """Kernel operating on (NB*H, W*C) slabs; one grid step = NB whole images."""
    Lin, Lout = W * Cin, W * Cout

    def lrelu(t):
        return jnp.where(t >= 0, t, NEG_SLOPE * t)

    def inst_norm(x, rsum, rbc, sel, bc):
        # x: (R, W*C) f32. Two-pass per-(batch, channel) instance norm.
        # rsum: (NB, R) per-batch row sums; rbc = rsum.T row broadcast.
        # sel: (W*C, C) lane collapse scaled by 1/(H*W); bc: (C, W*C) broadcast.
        mean = jnp.dot(jnp.dot(rsum, x, preferred_element_type=jnp.float32),
                       sel, preferred_element_type=jnp.float32)          # (NB, C)
        d = x - jnp.dot(rbc, jnp.dot(mean, bc, preferred_element_type=jnp.float32),
                        preferred_element_type=jnp.float32)
        var = jnp.dot(jnp.dot(rsum, d * d, preferred_element_type=jnp.float32),
                      sel, preferred_element_type=jnp.float32)           # biased
        rstd = jax.lax.rsqrt(var + EPS)
        return d * jnp.dot(rbc, jnp.dot(rstd, bc, preferred_element_type=jnp.float32),
                           preferred_element_type=jnp.float32)

    def conv(act, w_ref, b_ref):
        # act: (R, W*Ci) f32  ->  (R, W*Cout) f32.
        # H reflection + H shift via per-batch row slices (sublane concat);
        # W reflection + W shift folded into the im2row weight.  All K taps
        # fused into one matmul with contraction K*W*Ci.
        taps = []
        for dy in range(K):
            s = dy - P
            rows = []
            for n in range(NB):
                base = n * H
                if s < 0:
                    rows += [act[base + j:base + j + 1] for j in range(-s, 0, -1)]
                    rows.append(act[base:base + H + s])
                elif s == 0:
                    rows.append(act[base:base + H])
                else:
                    rows.append(act[base + s:base + H])
                    rows += [act[base + H - 2 - j:base + H - 1 - j] for j in range(s)]
            taps.append(rows[0] if len(rows) == 1 else jnp.concatenate(rows, axis=0))
        im2row = jnp.concatenate(taps, axis=1)                           # (R, K*W*Ci)
        return (jnp.dot(im2row.astype(w_ref.dtype), w_ref[...],
                        preferred_element_type=jnp.float32) + b_ref[...])

    def kernel(x_ref, cond_ref, rsum_ref, rbc_ref, sel_i_ref, bc_i_ref,
               sel_o_ref, bc_o_ref, sp1w_ref, sp1b_ref, c1w_ref, c1b_ref,
               sp2w_ref, sp2b_ref, c2w_ref, c2b_ref, *rest):
        if learned_shortcut:
            csw_ref, o_ref = rest
        else:
            (o_ref,) = rest

        x = x_ref[...]                                                   # (R, W*Cin) f32
        cond = cond_ref[...]                                             # (R, W*Ccond) mxu dtype
        rsum, rbc = rsum_ref[...], rbc_ref[...]

        # Instance norm of x computed once; shared by SPADE-1 and shortcut SPADE.
        xn = inst_norm(x, rsum, rbc, sel_i_ref[...], bc_i_ref[...])

        # One wide matmul for all SPADE-1 (+ shortcut) gamma/beta maps;
        # gamma biases already include the +1.
        gb1 = (jnp.dot(cond, sp1w_ref[...], preferred_element_type=jnp.float32)
               + sp1b_ref[...])
        dx = lrelu(xn * gb1[:, 0:Lin] + gb1[:, Lin:2 * Lin])
        dx = conv(dx, c1w_ref, c1b_ref)                                  # (R, W*Cout)

        dxn = inst_norm(dx, rsum, rbc, sel_o_ref[...], bc_o_ref[...])
        gb2 = (jnp.dot(cond, sp2w_ref[...], preferred_element_type=jnp.float32)
               + sp2b_ref[...])
        dx = lrelu(dxn * gb2[:, 0:Lout] + gb2[:, Lout:2 * Lout])
        dx = conv(dx, c2w_ref, c2b_ref)

        if learned_shortcut:
            xs = lrelu(xn * gb1[:, 2 * Lin:3 * Lin] + gb1[:, 3 * Lin:4 * Lin])
            dx = dx + jnp.dot(xs.astype(csw_ref.dtype), csw_ref[...],
                              preferred_element_type=jnp.float32)

        o_ref[...] = dx.astype(o_ref.dtype)                              # dense (R, 128k)

    return kernel


# --------------------------- host-side preparation ----------------------------

def _np(a):
    return np.asarray(jax.device_get(a), dtype=np.float32)


def _reflect(i, n):                     # PyTorch ReflectionPad2d index rule
    if i < 0:
        return -i
    if i >= n:
        return 2 * (n - 1) - i
    return i


def _conv_im2row_weight(w, W, K, P):
    """(K, K, Ci, Co) HWIO -> fused im2row weight (K*W*Ci, W*Co) with the W
    shift and W reflection padding folded in (numpy, host)."""
    _, _, Ci, Co = w.shape
    M = np.zeros((K * W * Ci, W * Co), np.float32)
    for dy in range(K):
        for dx in range(K):
            for wo in range(W):
                wi = _reflect(wo + dx - P, W)
                r0 = dy * W * Ci + wi * Ci
                M[r0:r0 + Ci, wo * Co:(wo + 1) * Co] += w[dy, dx]
    return M


def prepare_params(params, *, H, W, kernel_size, padding, batches_per_step,
                   mxu_dtype=jnp.bfloat16):
    """Build all kernel-side constant matrices ONCE (numpy, host). Cache the
    returned dict across forward calls; weights only change per train step."""
    K, P = kernel_size, padding
    NB = batches_per_step
    assert K == 2 * P + 1, "block preserves spatial resolution (K == 2P + 1)"
    assert P < H and P < W, "reflection padding must be smaller than spatial dims"

    g1w = _np(params["g1w"])
    Ccond, Cin = g1w.shape
    Cout = _np(params["conv1_w"]).shape[-1]
    learned_shortcut = (Cin != Cout)

    eyeW = np.eye(W, dtype=np.float32)

    def bdiag(m):                       # (Ci, Co) -> (W*Ci, W*Co); per-pixel 1x1
        return np.kron(eyeW, m)

    def tile_b(b, extra=0.0):           # (1, C) -> (1, W*C), lane = w*C + c
        return np.tile(np.asarray(b, np.float32).reshape(1, -1) + extra, (1, W))

    # Instance-norm selectors (per grid step: NB whole images).
    rsum = np.kron(np.eye(NB, dtype=np.float32), np.ones((1, H), np.float32))
    rbc = rsum.T.copy()

    def sel_bc(C):
        sel = np.kron(np.ones((W, 1), np.float32), np.eye(C, dtype=np.float32)) / (H * W)
        bc = np.kron(np.ones((1, W), np.float32), np.eye(C, dtype=np.float32))
        return sel, bc

    sel_i, bc_i = sel_bc(Cin)
    sel_o, bc_o = sel_bc(Cout)

    # Fused SPADE projections (gamma bias pre-incremented by 1).
    w_blocks = [_np(params["g1w"]), _np(params["b1w"])]
    b_blocks = [(_np(params["g1b"]), 1.0), (_np(params["b1b"]), 0.0)]
    if learned_shortcut:
        w_blocks += [_np(params["gsw"]), _np(params["bsw"])]
        b_blocks += [(_np(params["gsb"]), 1.0), (_np(params["bsb"]), 0.0)]
    sp1w = np.concatenate([bdiag(m) for m in w_blocks], axis=1)
    sp1b = np.concatenate([tile_b(b, e) for (b, e) in b_blocks], axis=1)
    sp2w = np.concatenate([bdiag(_np(params["g2w"])), bdiag(_np(params["b2w"]))], axis=1)
    sp2b = np.concatenate([tile_b(_np(params["g2b"]), 1.0),
                           tile_b(_np(params["b2b"]), 0.0)], axis=1)

    # Conv weights -> one fused im2row matrix per conv.
    c1w = _conv_im2row_weight(_np(params["conv1_w"]), W, K, P)
    c2w = _conv_im2row_weight(_np(params["conv2_w"]), W, K, P)
    c1b = tile_b(_np(params["conv1_b"]))
    c2b = tile_b(_np(params["conv2_b"]))

    consts = [
        jnp.asarray(rsum), jnp.asarray(rbc),
        jnp.asarray(sel_i), jnp.asarray(bc_i),
        jnp.asarray(sel_o), jnp.asarray(bc_o),
        jnp.asarray(sp1w, dtype=mxu_dtype), jnp.asarray(sp1b),
        jnp.asarray(c1w, dtype=mxu_dtype), jnp.asarray(c1b),
        jnp.asarray(sp2w, dtype=mxu_dtype), jnp.asarray(sp2b),
        jnp.asarray(c2w, dtype=mxu_dtype), jnp.asarray(c2b),
    ]
    if learned_shortcut:
        consts.append(jnp.asarray(bdiag(_np(params["conv_s_w"])), dtype=mxu_dtype))

    meta = dict(H=H, W=W, K=K, P=P, NB=NB, Cin=Cin, Cout=Cout, Ccond=Ccond,
                learned_shortcut=learned_shortcut, mxu_dtype=mxu_dtype)
    return {"consts": consts, "meta": meta}


# -------------------------------- wrapper ------------------------------------

def residual_spade_block(x_nchw, cond_nchw, prep):
    m = prep["meta"]
    H, W, Cin, Cout, Ccond, NB = m["H"], m["W"], m["Cin"], m["Cout"], m["Ccond"], m["NB"]
    N = x_nchw.shape[0]
    assert x_nchw.shape == (N, Cin, H, W), x_nchw.shape
    assert cond_nchw.shape == (N, Ccond, H, W), cond_nchw.shape
    assert N % NB == 0, "batch must be divisible by batches_per_step"

    f32 = jnp.float32
    # (N, C, H, W) -> rows = n*H + h, lanes = w*C + c.
    x2 = jnp.transpose(x_nchw, (0, 2, 3, 1)).reshape(N * H, W * Cin).astype(f32)
    cond2 = jnp.transpose(cond_nchw, (0, 2, 3, 1)).reshape(N * H, W * Ccond) \
               .astype(m["mxu_dtype"])

    consts = prep["consts"]
    R = NB * H
    grid = (N // NB,)

    in_specs = [pl.BlockSpec((R, W * Cin), lambda i: (i, 0)),
                pl.BlockSpec((R, W * Ccond), lambda i: (i, 0))]
    # Constant operands: full-array blocks, constant index -> resident across steps.
    in_specs += [pl.BlockSpec(c.shape, lambda i: (0, 0)) for c in consts]
    out_specs = pl.BlockSpec((R, W * Cout), lambda i: (i, 0))

    # VMEM budget: resident weights + double-buffered activation tiles.
    cond_isz = jnp.dtype(m["mxu_dtype"]).itemsize
    act_bytes = 2 * (R * W * Cin * 4 + R * W * Ccond * cond_isz + R * W * Cout * 4)
    const_bytes = sum(int(np.prod(c.shape)) * c.dtype.itemsize for c in consts)
    vmem_need = act_bytes + const_bytes
    assert vmem_need < 48 * 2 ** 20, (
        "weights too large for v7x VMEM; use the gridded / per-tap formulation "
        f"(need {vmem_need} bytes)")  # TODO(synk): gridded fallback at large W.
    vmem_limit = int(min(64 * 2 ** 20, max(16 * 2 ** 20, 2 * vmem_need)))

    out2 = pl.pallas_call(
        _make_kernel(H=H, W=W, K=m["K"], P=m["P"], NB=NB, Cin=Cin, Cout=Cout,
                     learned_shortcut=m["learned_shortcut"]),
        grid=grid,
        in_specs=in_specs,
        out_specs=out_specs,
        out_shape=jax.ShapeDtypeStruct((N * H, W * Cout), f32),
        compiler_params=pltpu.CompilerParams(
            dimension_semantics=("parallel",),
            vmem_limit_bytes=vmem_limit),
    )(x2, cond2, *consts)

    # (N*H, W*Cout) -> (N, Cout, H, W)
    return jnp.transpose(out2.reshape(N, H, W, Cout), (0, 3, 1, 2))


# ------------------------------ pure-JAX reference ----------------------------

def reference(x_nchw, cond_nchw, params, K, P):
    x = jnp.transpose(x_nchw, (0, 2, 3, 1)).astype(jnp.float32)
    cond = jnp.transpose(cond_nchw, (0, 2, 3, 1)).astype(jnp.float32)
    Cin = x.shape[-1]
    Cout = params["conv1_w"].shape[-1]

    def inorm(t):
        mean = jnp.mean(t, axis=(1, 2), keepdims=True)
        var = jnp.mean((t - mean) ** 2, axis=(1, 2), keepdims=True)
        return (t - mean) / jnp.sqrt(var + EPS)

    def spade(t, gw, gb, bw, bb):
        gamma = jnp.einsum("nhwc,cd->nhwd", cond, gw) + gb
        beta = jnp.einsum("nhwc,cd->nhwd", cond, bw) + bb
        return inorm(t) * (1.0 + gamma) + beta

    def lrelu(t):
        return jnp.where(t >= 0, t, NEG_SLOPE * t)

    def conv(t, w, b):
        t = jnp.pad(t, ((0, 0), (P, P), (P, P), (0, 0)), mode="reflect")
        y = jax.lax.conv_general_dilated(
            t, w, (1, 1), "VALID",
            dimension_numbers=("NHWC", "HWIO", "NHWC"))
        return y + b if b is not None else y

    dx = spade(x, params["g1w"], params["g1b"], params["b1w"], params["b1b"])
    dx = lrelu(dx)
    dx = conv(dx, params["conv1_w"], params["conv1_b"])
    dx = spade(dx, params["g2w"], params["g2b"], params["b2w"], params["b2b"])
    dx = lrelu(dx)
    dx = conv(dx, params["conv2_w"], params["conv2_b"])
    if Cin != Cout:
        xs = spade(x, params["gsw"], params["gsb"], params["bsw"], params["bsb"])
        xs = lrelu(xs)
        xs = jnp.einsum("nhwc,cd->nhwd", xs, params["conv_s_w"])
        dx = dx + xs
    return jnp.transpose(dx, (0, 3, 1, 2))


# ---------------------------------- main --------------------------------------

if __name__ == "__main__":
    N, Cin, Cout, Ccond = 2, 4, 8, 4
    H = W = 16
    K, P = 3, 1   # kernel_size=3, padding=1 -> spatial resolution preserved

    key = jax.random.PRNGKey(0)
    ks = jax.random.split(key, 24)

    def rn(k, shape, scale=0.1):
        return (scale * jax.random.normal(k, shape)).astype(jnp.float32)

    params = {
        # SPADE 1 (on in_planes)
        "g1w": rn(ks[0], (Ccond, Cin)), "g1b": rn(ks[1], (1, Cin)),
        "b1w": rn(ks[2], (Ccond, Cin)), "b1b": rn(ks[3], (1, Cin)),
        # conv1
        "conv1_w": rn(ks[4], (K, K, Cin, Cout)), "conv1_b": rn(ks[5], (1, Cout)),
        # SPADE 2 (on out_planes)
        "g2w": rn(ks[6], (Ccond, Cout)), "g2b": rn(ks[7], (1, Cout)),
        "b2w": rn(ks[8], (Ccond, Cout)), "b2b": rn(ks[9], (1, Cout)),
        # conv2
        "conv2_w": rn(ks[10], (K, K, Cout, Cout)), "conv2_b": rn(ks[11], (1, Cout)),
        # learned shortcut (in_planes != out_planes)
        "gsw": rn(ks[12], (Ccond, Cin)), "gsb": rn(ks[13], (1, Cin)),
        "bsw": rn(ks[14], (Ccond, Cin)), "bsb": rn(ks[15], (1, Cin)),
        "conv_s_w": rn(ks[16], (Cin, Cout)),   # 1x1 conv, no bias
    }

    x = jax.random.normal(ks[17], (N, Cin, H, W), dtype=jnp.float32)       # NCHW
    cond = jax.random.normal(ks[18], (N, Ccond, H, W), dtype=jnp.float32)  # NCHW

    ref = jax.block_until_ready(reference(x, cond, params, K, P))

    # f32 MXU operands: tight numerics check (v5e-friendly path).
    prep_f32 = prepare_params(params, H=H, W=W, kernel_size=K, padding=P,
                              batches_per_step=N, mxu_dtype=jnp.float32)
    out_f32 = jax.block_until_ready(residual_spade_block(x, cond, prep_f32))
    assert out_f32.shape == (N, Cout, H, W), out_f32.shape
    err32 = float(jnp.max(jnp.abs(out_f32 - ref)))
    assert jnp.allclose(out_f32, ref, rtol=2e-3, atol=2e-3), err32

    # bf16 MXU operands (v6e / v7x fast path): looser tolerance, f32 accumulate.
    prep_bf16 = prepare_params(params, H=H, W=W, kernel_size=K, padding=P,
                               batches_per_step=N, mxu_dtype=jnp.bfloat16)
    out_bf16 = jax.block_until_ready(residual_spade_block(x, cond, prep_bf16))
    errbf = float(jnp.max(jnp.abs(out_bf16 - ref)))
    assert jnp.allclose(out_bf16, ref, rtol=5e-2, atol=5e-2), errbf

    print("KERNEL_OK")
</pallas_src>

<mosaic_0001>
module attributes {stable_mosaic.version = 11 : i64} {
  func.func @kernel(%arg0: i32, %arg1: memref<32x64xf32, #tpu.memory_space<vmem>>, %arg2: memref<32x64xf32, #tpu.memory_space<vmem>>, %arg3: memref<2x32xf32, #tpu.memory_space<vmem>>, %arg4: memref<32x2xf32, #tpu.memory_space<vmem>>, %arg5: memref<64x4xf32, #tpu.memory_space<vmem>>, %arg6: memref<4x64xf32, #tpu.memory_space<vmem>>, %arg7: memref<128x8xf32, #tpu.memory_space<vmem>>, %arg8: memref<8x128xf32, #tpu.memory_space<vmem>>, %arg9: memref<64x256xf32, #tpu.memory_space<vmem>>, %arg10: memref<1x256xf32, #tpu.memory_space<vmem>>, %arg11: memref<192x128xf32, #tpu.memory_space<vmem>>, %arg12: memref<1x128xf32, #tpu.memory_space<vmem>>, %arg13: memref<64x256xf32, #tpu.memory_space<vmem>>, %arg14: memref<1x256xf32, #tpu.memory_space<vmem>>, %arg15: memref<384x128xf32, #tpu.memory_space<vmem>>, %arg16: memref<1x128xf32, #tpu.memory_space<vmem>>, %arg17: memref<64x128xf32, #tpu.memory_space<vmem>>, %arg18: memref<32x128xf32, #tpu.memory_space<vmem>>) attributes {dimension_semantics = [#tpu.dimension_semantics<parallel>], iteration_bounds = array<i64: 1>, scalar_prefetch = 0 : i64, scratch_operands = 0 : i64, tpu.core_type = #tpu.core_type<tc>, window_params = [{transform_indices = @transform_0, window_bounds = array<i64: 32, 64>}, {transform_indices = @transform_1, window_bounds = array<i64: 32, 64>}, {pipeline_mode = #tpu.pipeline_mode<synchronous>, transform_indices = @transform_2, window_bounds = array<i64: 2, 32>}, {pipeline_mode = #tpu.pipeline_mode<synchronous>, transform_indices = @transform_3, window_bounds = array<i64: 32, 2>}, {pipeline_mode = #tpu.pipeline_mode<synchronous>, transform_indices = @transform_4, window_bounds = array<i64: 64, 4>}, {pipeline_mode = #tpu.pipeline_mode<synchronous>, transform_indices = @transform_5, window_bounds = array<i64: 4, 64>}, {pipeline_mode = #tpu.pipeline_mode<synchronous>, transform_indices = @transform_6, window_bounds = array<i64: 128, 8>}, {pipeline_mode = #tpu.pipeline_mode<synchronous>, transform_indices = @transform_7, window_bounds = array<i64: 8, 128>}, {pipeline_mode = #tpu.pipeline_mode<synchronous>, transform_indices = @transform_8, window_bounds = array<i64: 64, 256>}, {pipeline_mode = #tpu.pipeline_mode<synchronous>, transform_indices = @transform_9, window_bounds = array<i64: 1, 256>}, {pipeline_mode = #tpu.pipeline_mode<synchronous>, transform_indices = @transform_10, window_bounds = array<i64: 192, 128>}, {pipeline_mode = #tpu.pipeline_mode<synchronous>, transform_indices = @transform_11, window_bounds = array<i64: 1, 128>}, {pipeline_mode = #tpu.pipeline_mode<synchronous>, transform_indices = @transform_12, window_bounds = array<i64: 64, 256>}, {pipeline_mode = #tpu.pipeline_mode<synchronous>, transform_indices = @transform_13, window_bounds = array<i64: 1, 256>}, {pipeline_mode = #tpu.pipeline_mode<synchronous>, transform_indices = @transform_14, window_bounds = array<i64: 384, 128>}, {pipeline_mode = #tpu.pipeline_mode<synchronous>, transform_indices = @transform_15, window_bounds = array<i64: 1, 128>}, {pipeline_mode = #tpu.pipeline_mode<synchronous>, transform_indices = @transform_16, window_bounds = array<i64: 64, 128>}, {transform_indices = @transform_17, window_bounds = array<i64: 32, 128>}]} {
    %c0 = arith.constant 0 : index
    %c0_0 = arith.constant 0 : index
    %0 = vector.load %arg1[%c0, %c0_0] : memref<32x64xf32, #tpu.memory_space<vmem>>, vector<32x64xf32>
    %c0_1 = arith.constant 0 : index
    %c0_2 = arith.constant 0 : index
    %1 = vector.load %arg2[%c0_1, %c0_2] : memref<32x64xf32, #tpu.memory_space<vmem>>, vector<32x64xf32>
    %c0_3 = arith.constant 0 : index
    %c0_4 = arith.constant 0 : index
    %2 = vector.load %arg3[%c0_3, %c0_4] : memref<2x32xf32, #tpu.memory_space<vmem>>, vector<2x32xf32>
    %c0_5 = arith.constant 0 : index
    %c0_6 = arith.constant 0 : index
    %3 = vector.load %arg4[%c0_5, %c0_6] : memref<32x2xf32, #tpu.memory_space<vmem>>, vector<32x2xf32>
    %c0_7 = arith.constant 0 : index
    %c0_8 = arith.constant 0 : index
    %4 = vector.load %arg5[%c0_7, %c0_8] : memref<64x4xf32, #tpu.memory_space<vmem>>, vector<64x4xf32>
    %c0_9 = arith.constant 0 : index
    %c0_10 = arith.constant 0 : index
    %5 = vector.load %arg6[%c0_9, %c0_10] : memref<4x64xf32, #tpu.memory_space<vmem>>, vector<4x64xf32>
    %cst = arith.constant dense<0.000000e+00> : vector<2x64xf32>
    %6 = tpu.matmul %2, %0, %cst {dimension_numbers = #tpu.dot_dimension_numbers<[1], [0], [0], [1], [0, 0, 1, 1], [], []>} : vector<2x32xf32>, vector<32x64xf32>, vector<2x64xf32> -> vector<2x64xf32>
    %cst_11 = arith.constant dense<0.000000e+00> : vector<2x4xf32>
    %7 = tpu.matmul %6, %4, %cst_11 {dimension_numbers = #tpu.dot_dimension_numbers<[1], [0], [0], [1], [0, 0, 1, 1], [], []>} : vector<2x64xf32>, vector<64x4xf32>, vector<2x4xf32> -> vector<2x4xf32>
    %cst_12 = arith.constant dense<0.000000e+00> : vector<2x64xf32>
    %8 = tpu.matmul %7, %5, %cst_12 {dimension_numbers = #tpu.dot_dimension_numbers<[1], [0], [0], [1], [0, 0, 1, 1], [], []>} : vector<2x4xf32>, vector<4x64xf32>, vector<2x64xf32> -> vector<2x64xf32>
    %cst_13 = arith.constant dense<0.000000e+00> : vector<32x64xf32>
    %9 = tpu.matmul %3, %8, %cst_13 {dimension_numbers = #tpu.dot_dimension_numbers<[1], [0], [0], [1], [0, 0, 1, 1], [], []>} : vector<32x2xf32>, vector<2x64xf32>, vector<32x64xf32> -> vector<32x64xf32>
    %10 = arith.subf %0, %9 : vector<32x64xf32>
    %11 = arith.mulf %10, %10 : vector<32x64xf32>
    %cst_14 = arith.constant dense<0.000000e+00> : vector<2x64xf32>
    %12 = tpu.matmul %2, %11, %cst_14 {dimension_numbers = #tpu.dot_dimension_numbers<[1], [0], [0], [1], [0, 0, 1, 1], [], []>} : vector<2x32xf32>, vector<32x64xf32>, vector<2x64xf32> -> vector<2x64xf32>
    %cst_15 = arith.constant dense<0.000000e+00> : vector<2x4xf32>
    %13 = tpu.matmul %12, %4, %cst_15 {dimension_numbers = #tpu.dot_dimension_numbers<[1], [0], [0], [1], [0, 0, 1, 1], [], []>} : vector<2x64xf32>, vector<64x4xf32>, vector<2x4xf32> -> vector<2x4xf32>
    %cst_16 = arith.constant 9.99999974E-6 : f32
    %14 = vector.broadcast %cst_16 : f32 to vector<2x4xf32>
    %15 = arith.addf %13, %14 : vector<2x4xf32>
    %16 = math.rsqrt %15 : vector<2x4xf32>
    %cst_17 = arith.constant dense<0.000000e+00> : vector<2x64xf32>
    %17 = tpu.matmul %16, %5, %cst_17 {dimension_numbers = #tpu.dot_dimension_numbers<[1], [0], [0], [1], [0, 0, 1, 1], [], []>} : vector<2x4xf32>, vector<4x64xf32>, vector<2x64xf32> -> vector<2x64xf32>
    %cst_18 = arith.constant dense<0.000000e+00> : vector<32x64xf32>
    %18 = tpu.matmul %3, %17, %cst_18 {dimension_numbers = #tpu.dot_dimension_numbers<[1], [0], [0], [1], [0, 0, 1, 1], [], []>} : vector<32x2xf32>, vector<2x64xf32>, vector<32x64xf32> -> vector<32x64xf32>
    %19 = arith.mulf %10, %18 : vector<32x64xf32>
    %c0_19 = arith.constant 0 : index
    %c0_20 = arith.constant 0 : index
    %20 = vector.load %arg9[%c0_19, %c0_20] : memref<64x256xf32, #tpu.memory_space<vmem>>, vector<64x256xf32>
    %cst_21 = arith.constant dense<0.000000e+00> : vector<32x256xf32>
    %21 = tpu.matmul %1, %20, %cst_21 {dimension_numbers = #tpu.dot_dimension_numbers<[1], [0], [0], [1], [0, 0, 1, 1], [], []>} : vector<32x64xf32>, vector<64x256xf32>, vector<32x256xf32> -> vector<32x256xf32>
    %c0_22 = arith.constant 0 : index
    %c0_23 = arith.constant 0 : index
    %22 = vector.load %arg10[%c0_22, %c0_23] : memref<1x256xf32, #tpu.memory_space<vmem>>, vector<1x256xf32>
    %23 = vector.broadcast %22 : vector<1x256xf32> to vector<32x256xf32>
    %24 = arith.addf %21, %23 : vector<32x256xf32>
    %25 = vector.extract_strided_slice %24 {offsets = [0, 0], sizes = [32, 64], strides = [1, 1]} : vector<32x256xf32> to vector<32x64xf32>
    %26 = arith.mulf %19, %25 : vector<32x64xf32>
    %27 = vector.extract_strided_slice %24 {offsets = [0, 64], sizes = [32, 64], strides = [1, 1]} : vector<32x256xf32> to vector<32x64xf32>
    %28 = arith.addf %26, %27 : vector<32x64xf32>
    %cst_24 = arith.constant 0.000000e+00 : f32
    %29 = vector.broadcast %cst_24 : f32 to vector<32x64xf32>
    %30 = arith.cmpf oge, %28, %29 : vector<32x64xf32>
    %cst_25 = arith.constant 2.000000e-01 : f32
    %31 = vector.broadcast %cst_25 : f32 to vector<32x64xf32>
    %32 = arith.mulf %31, %28 : vector<32x64xf32>
    %33 = arith.select %30, %28, %32 : vector<32x64xi1>, vector<32x64xf32>
    %34 = vector.extract_strided_slice %33 {offsets = [1, 0], sizes = [1, 64], strides = [1, 1]} : vector<32x64xf32> to vector<1x64xf32>
    %35 = vector.extract_strided_slice %33 {offsets = [0, 0], sizes = [15, 64], strides = [1, 1]} : vector<32x64xf32> to vector<15x64xf32>
    %36 = vector.extract_strided_slice %33 {offsets = [17, 0], sizes = [1, 64], strides = [1, 1]} : vector<32x64xf32> to vector<1x64xf32>
    %37 = vector.extract_strided_slice %33 {offsets = [16, 0], sizes = [15, 64], strides = [1, 1]} : vector<32x64xf32> to vector<15x64xf32>
    %38 = tpu.concatenate %34, %35, %36, %37 in 0 : vector<1x64xf32>, vector<15x64xf32>, vector<1x64xf32>, vector<15x64xf32> -> vector<32x64xf32>
    %39 = vector.extract_strided_slice %33 {offsets = [0, 0], sizes = [16, 64], strides = [1, 1]} : vector<32x64xf32> to vector<16x64xf32>
    %40 = vector.extract_strided_slice %33 {offsets = [16, 0], sizes = [16, 64], strides = [1, 1]} : vector<32x64xf32> to vector<16x64xf32>
    %41 = tpu.concatenate %39, %40 in 0 : vector<16x64xf32>, vector<16x64xf32> -> vector<32x64xf32>
    %42 = vector.extract_strided_slice %33 {offsets = [1, 0], sizes = [15, 64], strides = [1, 1]} : vector<32x64xf32> to vector<15x64xf32>
    %43 = vector.extract_strided_slice %33 {offsets = [14, 0], sizes = [1, 64], strides = [1, 1]} : vector<32x64xf32> to vector<1x64xf32>
    %44 = vector.extract_strided_slice %33 {offsets = [17, 0], sizes = [15, 64], strides = [1, 1]} : vector<32x64xf32> to vector<15x64xf32>
    %45 = vector.extract_strided_slice %33 {offsets = [30, 0], sizes = [1, 64], strides = [1, 1]} : vector<32x64xf32> to vector<1x64xf32>
    %46 = tpu.concatenate %42, %43, %44, %45 in 0 : vector<15x64xf32>, vector<1x64xf32>, vector<15x64xf32>, vector<1x64xf32> -> vector<32x64xf32>
    %47 = tpu.concatenate %38, %41, %46 in 1 : vector<32x64xf32>, vector<32x64xf32>, vector<32x64xf32> -> vector<32x192xf32>
    %c0_26 = arith.constant 0 : index
    %c0_27 = arith.constant 0 : index
    %48 = vector.load %arg11[%c0_26, %c0_27] : memref<192x128xf32, #tpu.memory_space<vmem>>, vector<192x128xf32>
    %cst_28 = arith.constant dense<0.000000e+00> : vector<32x128xf32>
    %49 = tpu.matmul %47, %48, %cst_28 {dimension_numbers = #tpu.dot_dimension_numbers<[1], [0], [0], [1], [0, 0, 1, 1], [], []>} : vector<32x192xf32>, vector<192x128xf32>, vector<32x128xf32> -> vector<32x128xf32>
    %c0_29 = arith.constant 0 : index
    %c0_30 = arith.constant 0 : index
    %50 = vector.load %arg12[%c0_29, %c0_30] : memref<1x128xf32, #tpu.memory_space<vmem>>, vector<1x128xf32>
    %51 = vector.broadcast %50 : vector<1x128xf32> to vector<32x128xf32>
    %52 = arith.addf %49, %51 : vector<32x128xf32>
    %c0_31 = arith.constant 0 : index
    %c0_32 = arith.constant 0 : index
    %53 = vector.load %arg7[%c0_31, %c0_32] : memref<128x8xf32, #tpu.memory_space<vmem>>, vector<128x8xf32>
    %c0_33 = arith.constant 0 : index
    %c0_34 = arith.constant 0 : index
    %54 = vector.load %arg8[%c0_33, %c0_34] : memref<8x128xf32, #tpu.memory_space<vmem>>, vector<8x128xf32>
    %cst_35 = arith.constant dense<0.000000e+00> : vector<2x128xf32>
    %55 = tpu.matmul %2, %52, %cst_35 {dimension_numbers = #tpu.dot_dimension_numbers<[1], [0], [0], [1], [0, 0, 1, 1], [], []>} : vector<2x32xf32>, vector<32x128xf32>, vector<2x128xf32> -> vector<2x128xf32>
    %cst_36 = arith.constant dense<0.000000e+00> : vector<2x8xf32>
    %56 = tpu.matmul %55, %53, %cst_36 {dimension_numbers = #tpu.dot_dimension_numbers<[1], [0], [0], [1], [0, 0, 1, 1], [], []>} : vector<2x128xf32>, vector<128x8xf32>, vector<2x8xf32> -> vector<2x8xf32>
    %cst_37 = arith.constant dense<0.000000e+00> : vector<2x128xf32>
    %57 = tpu.matmul %56, %54, %cst_37 {dimension_numbers = #tpu.dot_dimension_numbers<[1], [0], [0], [1], [0, 0, 1, 1], [], []>} : vector<2x8xf32>, vector<8x128xf32>, vector<2x128xf32> -> vector<2x128xf32>
    %cst_38 = arith.constant dense<0.000000e+00> : vector<32x128xf32>
    %58 = tpu.matmul %3, %57, %cst_38 {dimension_numbers = #tpu.dot_dimension_numbers<[1], [0], [0], [1], [0, 0, 1, 1], [], []>} : vector<32x2xf32>, vector<2x128xf32>, vector<32x128xf32> -> vector<32x128xf32>
    %59 = arith.subf %52, %58 : vector<32x128xf32>
    %60 = arith.mulf %59, %59 : vector<32x128xf32>
    %cst_39 = arith.constant dense<0.000000e+00> : vector<2x128xf32>
    %61 = tpu.matmul %2, %60, %cst_39 {dimension_numbers = #tpu.dot_dimension_numbers<[1], [0], [0], [1], [0, 0, 1, 1], [], []>} : vector<2x32xf32>, vector<32x128xf32>, vector<2x128xf32> -> vector<2x128xf32>
    %cst_40 = arith.constant dense<0.000000e+00> : vector<2x8xf32>
    %62 = tpu.matmul %61, %53, %cst_40 {dimension_numbers = #tpu.dot_dimension_numbers<[1], [0], [0], [1], [0, 0, 1, 1], [], []>} : vector<2x128xf32>, vector<128x8xf32>, vector<2x8xf32> -> vector<2x8xf32>
    %cst_41 = arith.constant 9.99999974E-6 : f32
    %63 = vector.broadcast %cst_41 : f32 to vector<2x8xf32>
    %64 = arith.addf %62, %63 : vector<2x8xf32>
    %65 = math.rsqrt %64 : vector<2x8xf32>
    %cst_42 = arith.constant dense<0.000000e+00> : vector<2x128xf32>
    %66 = tpu.matmul %65, %54, %cst_42 {dimension_numbers = #tpu.dot_dimension_numbers<[1], [0], [0], [1], [0, 0, 1, 1], [], []>} : vector<2x8xf32>, vector<8x128xf32>, vector<2x128xf32> -> vector<2x128xf32>
    %cst_43 = arith.constant dense<0.000000e+00> : vector<32x128xf32>
    %67 = tpu.matmul %3, %66, %cst_43 {dimension_numbers = #tpu.dot_dimension_numbers<[1], [0], [0], [1], [0, 0, 1, 1], [], []>} : vector<32x2xf32>, vector<2x128xf32>, vector<32x128xf32> -> vector<32x128xf32>
    %68 = arith.mulf %59, %67 : vector<32x128xf32>
    %c0_44 = arith.constant 0 : index
    %c0_45 = arith.constant 0 : index
    %69 = vector.load %arg13[%c0_44, %c0_45] : memref<64x256xf32, #tpu.memory_space<vmem>>, vector<64x256xf32>
    %cst_46 = arith.constant dense<0.000000e+00> : vector<32x256xf32>
    %70 = tpu.matmul %1, %69, %cst_46 {dimension_numbers = #tpu.dot_dimension_numbers<[1], [0], [0], [1], [0, 0, 1, 1], [], []>} : vector<32x64xf32>, vector<64x256xf32>, vector<32x256xf32> -> vector<32x256xf32>
    %c0_47 = arith.constant 0 : index
    %c0_48 = arith.constant 0 : index
    %71 = vector.load %arg14[%c0_47, %c0_48] : memref<1x256xf32, #tpu.memory_space<vmem>>, vector<1x256xf32>
    %72 = vector.broadcast %71 : vector<1x256xf32> to vector<32x256xf32>
    %73 = arith.addf %70, %72 : vector<32x256xf32>
    %74 = vector.extract_strided_slice %73 {offsets = [0, 0], sizes = [32, 128], strides = [1, 1]} : vector<32x256xf32> to vector<32x128xf32>
    %75 = arith.mulf %68, %74 : vector<32x128xf32>
    %76 = vector.extract_strided_slice %73 {offsets = [0, 128], sizes = [32, 128], strides = [1, 1]} : vector<32x256xf32> to vector<32x128xf32>
    %77 = arith.addf %75, %76 : vector<32x128xf32>
    %cst_49 = arith.constant 0.000000e+00 : f32
    %78 = vector.broadcast %cst_49 : f32 to vector<32x128xf32>
    %79 = arith.cmpf oge, %77, %78 : vector<32x128xf32>
    %cst_50 = arith.constant 2.000000e-01 : f32
    %80 = vector.broadcast %cst_50 : f32 to vector<32x128xf32>
    %81 = arith.mulf %80, %77 : vector<32x128xf32>
    %82 = arith.select %79, %77, %81 : vector<32x128xi1>, vector<32x128xf32>
    %83 = vector.extract_strided_slice %82 {offsets = [1, 0], sizes = [1, 128], strides = [1, 1]} : vector<32x128xf32> to vector<1x128xf32>
    %84 = vector.extract_strided_slice %82 {offsets = [0, 0], sizes = [15, 128], strides = [1, 1]} : vector<32x128xf32> to vector<15x128xf32>
    %85 = vector.extract_strided_slice %82 {offsets = [17, 0], sizes = [1, 128], strides = [1, 1]} : vector<32x128xf32> to vector<1x128xf32>
    %86 = vector.extract_strided_slice %82 {offsets = [16, 0], sizes = [15, 128], strides = [1, 1]} : vector<32x128xf32> to vector<15x128xf32>
    %87 = tpu.concatenate %83, %84, %85, %86 in 0 : vector<1x128xf32>, vector<15x128xf32>, vector<1x128xf32>, vector<15x128xf32> -> vector<32x128xf32>
    %88 = vector.extract_strided_slice %82 {offsets = [0, 0], sizes = [16, 128], strides = [1, 1]} : vector<32x128xf32> to vector<16x128xf32>
    %89 = vector.extract_strided_slice %82 {offsets = [16, 0], sizes = [16, 128], strides = [1, 1]} : vector<32x128xf32> to vector<16x128xf32>
    %90 = tpu.concatenate %88, %89 in 0 : vector<16x128xf32>, vector<16x128xf32> -> vector<32x128xf32>
    %91 = vector.extract_strided_slice %82 {offsets = [1, 0], sizes = [15, 128], strides = [1, 1]} : vector<32x128xf32> to vector<15x128xf32>
    %92 = vector.extract_strided_slice %82 {offsets = [14, 0], sizes = [1, 128], strides = [1, 1]} : vector<32x128xf32> to vector<1x128xf32>
    %93 = vector.extract_strided_slice %82 {offsets = [17, 0], sizes = [15, 128], strides = [1, 1]} : vector<32x128xf32> to vector<15x128xf32>
    %94 = vector.extract_strided_slice %82 {offsets = [30, 0], sizes = [1, 128], strides = [1, 1]} : vector<32x128xf32> to vector<1x128xf32>
    %95 = tpu.concatenate %91, %92, %93, %94 in 0 : vector<15x128xf32>, vector<1x128xf32>, vector<15x128xf32>, vector<1x128xf32> -> vector<32x128xf32>
    %96 = tpu.concatenate %87, %90, %95 in 1 : vector<32x128xf32>, vector<32x128xf32>, vector<32x128xf32> -> vector<32x384xf32>
    %c0_51 = arith.constant 0 : index
    %c0_52 = arith.constant 0 : index
    %97 = vector.load %arg15[%c0_51, %c0_52] : memref<384x128xf32, #tpu.memory_space<vmem>>, vector<384x128xf32>
    %cst_53 = arith.constant dense<0.000000e+00> : vector<32x128xf32>
    %98 = tpu.matmul %96, %97, %cst_53 {dimension_numbers = #tpu.dot_dimension_numbers<[1], [0], [0], [1], [0, 0, 1, 1], [], []>} : vector<32x384xf32>, vector<384x128xf32>, vector<32x128xf32> -> vector<32x128xf32>
    %c0_54 = arith.constant 0 : index
    %c0_55 = arith.constant 0 : index
    %99 = vector.load %arg16[%c0_54, %c0_55] : memref<1x128xf32, #tpu.memory_space<vmem>>, vector<1x128xf32>
    %100 = vector.broadcast %99 : vector<1x128xf32> to vector<32x128xf32>
    %101 = arith.addf %98, %100 : vector<32x128xf32>
    %102 = vector.extract_strided_slice %24 {offsets = [0, 128], sizes = [32, 64], strides = [1, 1]} : vector<32x256xf32> to vector<32x64xf32>
    %103 = arith.mulf %19, %102 : vector<32x64xf32>
    %104 = vector.extract_strided_slice %24 {offsets = [0, 192], sizes = [32, 64], strides = [1, 1]} : vector<32x256xf32> to vector<32x64xf32>
    %105 = arith.addf %103, %104 : vector<32x64xf32>
    %cst_56 = arith.constant 0.000000e+00 : f32
    %106 = vector.broadcast %cst_56 : f32 to vector<32x64xf32>
    %107 = arith.cmpf oge, %105, %106 : vector<32x64xf32>
    %cst_57 = arith.constant 2.000000e-01 : f32
    %108 = vector.broadcast %cst_57 : f32 to vector<32x64xf32>
    %109 = arith.mulf %108, %105 : vector<32x64xf32>
    %110 = arith.select %107, %105, %109 : vector<32x64xi1>, vector<32x64xf32>
    %c0_58 = arith.constant 0 : index
    %c0_59 = arith.constant 0 : index
    %111 = vector.load %arg17[%c0_58, %c0_59] : memref<64x128xf32, #tpu.memory_space<vmem>>, vector<64x128xf32>
    %cst_60 = arith.constant dense<0.000000e+00> : vector<32x128xf32>
    %112 = tpu.matmul %110, %111, %cst_60 {dimension_numbers = #tpu.dot_dimension_numbers<[1], [0], [0], [1], [0, 0, 1, 1], [], []>} : vector<32x64xf32>, vector<64x128xf32>, vector<32x128xf32> -> vector<32x128xf32>
    %113 = arith.addf %101, %112 : vector<32x128xf32>
    %c0_61 = arith.constant 0 : index
    %c0_62 = arith.constant 0 : index
    %114 = vector.load %arg18[%c0_61, %c0_62] : memref<32x128xf32, #tpu.memory_space<vmem>>, vector<32x128xf32>
    tpu.vector_store %arg18[%c0_61, %c0_62], %113 {strides = array<i32>} : memref<32x128xf32, #tpu.memory_space<vmem>>, vector<32x128xf32>,
    return
  }
  func.func @transform_0(%arg0: i32) -> (i32, i32) {
    %c0_i32 = arith.constant 0 : i32
    %c0_i32_0 = arith.constant 0 : i32
    return %arg0, %c0_i32 : i32, i32
  }
  func.func @transform_1(%arg0: i32) -> (i32, i32) {
    %c0_i32 = arith.constant 0 : i32
    %c0_i32_0 = arith.constant 0 : i32
    return %arg0, %c0_i32 : i32, i32
  }
  func.func @transform_2(%arg0: i32) -> (i32, i32) {
    %c0_i32 = arith.constant 0 : i32
    %c0_i32_0 = arith.constant 0 : i32
    %c0_i32_1 = arith.constant 0 : i32
    return %c0_i32, %c0_i32_0 : i32, i32
  }
  func.func @transform_3(%arg0: i32) -> (i32, i32) {
    %c0_i32 = arith.constant 0 : i32
    %c0_i32_0 = arith.constant 0 : i32
    %c0_i32_1 = arith.constant 0 : i32
    return %c0_i32, %c0_i32_0 : i32, i32
  }
  func.func @transform_4(%arg0: i32) -> (i32, i32) {
    %c0_i32 = arith.constant 0 : i32
    %c0_i32_0 = arith.constant 0 : i32
    %c0_i32_1 = arith.constant 0 : i32
    return %c0_i32, %c0_i32_0 : i32, i32
  }
  func.func @transform_5(%arg0: i32) -> (i32, i32) {
    %c0_i32 = arith.constant 0 : i32
    %c0_i32_0 = arith.constant 0 : i32
    %c0_i32_1 = arith.constant 0 : i32
    return %c0_i32, %c0_i32_0 : i32, i32
  }
  func.func @transform_6(%arg0: i32) -> (i32, i32) {
    %c0_i32 = arith.constant 0 : i32
    %c0_i32_0 = arith.constant 0 : i32
    %c0_i32_1 = arith.constant 0 : i32
    return %c0_i32, %c0_i32_0 : i32, i32
  }
  func.func @transform_7(%arg0: i32) -> (i32, i32) {
    %c0_i32 = arith.constant 0 : i32
    %c0_i32_0 = arith.constant 0 : i32
    %c0_i32_1 = arith.constant 0 : i32
    return %c0_i32, %c0_i32_0 : i32, i32
  }
  func.func @transform_8(%arg0: i32) -> (i32, i32) {
    %c0_i32 = arith.constant 0 : i32
    %c0_i32_0 = arith.constant 0 : i32
    %c0_i32_1 = arith.constant 0 : i32
    return %c0_i32, %c0_i32_0 : i32, i32
  }
  func.func @transform_9(%arg0: i32) -> (i32, i32) {
    %c0_i32 = arith.constant 0 : i32
    %c0_i32_0 = arith.constant 0 : i32
    %c0_i32_1 = arith.constant 0 : i32
    return %c0_i32, %c0_i32_0 : i32, i32
  }
  func.func @transform_10(%arg0: i32) -> (i32, i32) {
    %c0_i32 = arith.constant 0 : i32
    %c0_i32_0 = arith.constant 0 : i32
    %c0_i32_1 = arith.constant 0 : i32
    return %c0_i32, %c0_i32_0 : i32, i32
  }
  func.func @transform_11(%arg0: i32) -> (i32, i32) {
    %c0_i32 = arith.constant 0 : i32
    %c0_i32_0 = arith.constant 0 : i32
    %c0_i32_1 = arith.constant 0 : i32
    return %c0_i32, %c0_i32_0 : i32, i32
  }
  func.func @transform_12(%arg0: i32) -> (i32, i32) {
    %c0_i32 = arith.constant 0 : i32
    %c0_i32_0 = arith.constant 0 : i32
    %c0_i32_1 = arith.constant 0 : i32
    return %c0_i32, %c0_i32_0 : i32, i32
  }
  func.func @transform_13(%arg0: i32) -> (i32, i32) {
    %c0_i32 = arith.constant 0 : i32
    %c0_i32_0 = arith.constant 0 : i32
    %c0_i32_1 = arith.constant 0 : i32
    return %c0_i32, %c0_i32_0 : i32, i32
  }
  func.func @transform_14(%arg0: i32) -> (i32, i32) {
    %c0_i32 = arith.constant 0 : i32
    %c0_i32_0 = arith.constant 0 : i32
    %c0_i32_1 = arith.constant 0 : i32
    return %c0_i32, %c0_i32_0 : i32, i32
  }
  func.func @transform_15(%arg0: i32) -> (i32, i32) {
    %c0_i32 = arith.constant 0 : i32
    %c0_i32_0 = arith.constant 0 : i32
    %c0_i32_1 = arith.constant 0 : i32
    return %c0_i32, %c0_i32_0 : i32, i32
  }
  func.func @transform_16(%arg0: i32) -> (i32, i32) {
    %c0_i32 = arith.constant 0 : i32
    %c0_i32_0 = arith.constant 0 : i32
    %c0_i32_1 = arith.constant 0 : i32
    return %c0_i32, %c0_i32_0 : i32, i32
  }
  func.func @transform_17(%arg0: i32) -> (i32, i32) {
    %c0_i32 = arith.constant 0 : i32
    %c0_i32_0 = arith.constant 0 : i32
    return %arg0, %c0_i32 : i32, i32
  }
}

</mosaic_0001>

<bundles_post_ra>
// kernel: tpu_custom_call.1
= control target key start
LH: loop header
LB: loop body
LE: loop exit
PB: predicated region body
PF: predicated region fallthrough
CT: control target
= control target key end

     0   :  { %s3899_s0 = inlined_call_operand.hbm [shape: f32[32,64], index: 0, kind: input, shape index: {}]   ;;  %s3900_s1 = inlined_call_operand.hbm [shape: f32[32,64], index: 1, kind: input, shape index: {}]   ;;  %s3901_s2 = inlined_call_operand.hbm [shape: f32[2,32], index: 2, kind: input, shape index: {}]   ;;  %s3902_s3 = inlined_call_operand.vmem [shape: f32[32,2], index: 3, kind: input, shape index: {}]   ;;  %s3903_s4 = inlined_call_operand.vmem [shape: f32[64,4], index: 4, kind: input, shape index: {}]   ;;  %s3904_s5 = inlined_call_operand.hbm [shape: f32[4,64], index: 5, kind: input, shape index: {}]   ;;  %s3905_s6 = inlined_call_operand.vmem [shape: f32[128,8], index: 6, kind: input, shape index: {}]   ;;  %s3906_s7 = inlined_call_operand.hbm [shape: f32[8,128], index: 7, kind: input, shape index: {}]   ;;  %s3907_s8 = inlined_call_operand.hbm [shape: f32[64,256], index: 8, kind: input, shape index: {}]   ;;  %s3908_s9 = inlined_call_operand.hbm [shape: f32[1,256], index: 9, kind: input, shape index: {}]   ;;  %s3909_s10 = inlined_call_operand.vmem [shape: f32[192,128], index: 10, kind: input, shape index: {}]   ;;  %s3910_s11 = inlined_call_operand.hbm [shape: f32[1,128], index: 11, kind: input, shape index: {}]   ;;  %s3911_s12 = inlined_call_operand.hbm [shape: f32[64,256], index: 12, kind: input, shape index: {}]   ;;  %s3912_s13 = inlined_call_operand.vmem [shape: f32[1,256], index: 13, kind: input, shape index: {}]   ;;  %s3913_s14 = inlined_call_operand.hbm [shape: f32[384,128], index: 14, kind: input, shape index: {}]   ;;  %s3914_s15 = inlined_call_operand.vmem [shape: f32[1,128], index: 15, kind: input, shape index: {}]   ;;  %s3915_s16 = inlined_call_operand.vmem [shape: f32[64,128], index: 16, kind: input, shape index: {}]   ;;  %s3916_s17 = inlined_call_operand.hbm [shape: f32[32,128], index: 17, kind: output, shape index: {}]  }
   0x1   :  { %3917 = sst [smem:[#allocation27_spill]] %s3899_s0 }
   0x2   :  { %3918 = sst [smem:[#allocation28_spill]] %s3900_s1 }
   0x3   :  { %22 = vsyncpa [#allocation3], 0 }
   0x4   :  { %23 = vsyncpa [#allocation6], 0 }
   0x5   :  { %24 = vsyncpa [#allocation9], 0 }
   0x6   :  { %25 = vsyncpa [#allocation12], 0 }
   0x7   :  { %26 = vsyncpa [#allocation15], 0 }
   0x8   :  { %27 = vsyncpa [#allocation18], 0 }
   0x9   :  { %28 = vsyncpa [#allocation4], 0  ;;  %s3133_s24 = smov [#allocation5]   ;;  %s3134_s26 = smov [#allocation8]  }
   0xa   :  { %s46_s25 = sshll.u32 %s3133_s24, 4  ;;  %s73_s27 = sshll.u32 %s3134_s26, 4  ;;  %s47_s25 = int_to_ptr.vmem [resolvable:$true] %s46_s25  ;;  %s74_s27 = int_to_ptr.vmem [resolvable:$true] %s73_s27 }
   0xb   :  { %s2907_s28 = scalar_lea.vmem %s47_s25, 512  ;;  %p2912_p1 = scmp.lt.s32.totalorder %s47_s25, %s47_s25 }
   0xc   :  { %p2908_p0 = scmp.ne.s32.totalorder %s47_s25, %s2907_s28  ;;  %p2913_p2 = scmp.lt.s32.totalorder %s2907_s28, %s2907_s28 }
   0xe   :  { %p2914_p3 = por %p2913_p2, %p2912_p1 }
  0x10   :  { %p2915_p4 = pnand %p2914_p3, %p2908_p0 }
  0x12   :  { %2918 = shalt.err (!%p2915_p4)
}
  0x13   :  { %s3135_s29 = smov 128   ;;  %s3136_s0 = smov 8  }
  0x14   :  { %s3919_s19 = sld [smem:[#allocation28_spill]]  ;;  %s2927_s1 = scalar_lea.vmem %s74_s27, 64 }
  0x15   :  { %p2928_p5 = scmp.ne.s32.totalorder %s74_s27, %s2927_s1  ;;  %p2932_p6 = scmp.lt.s32.totalorder %s74_s27, %s74_s27 }
  0x16   :  { %p2933_p7 = scmp.lt.s32.totalorder %s2927_s1, %s2927_s1 }
  0x18   :  { %p2934_p8 = por %p2933_p7, %p2932_p6 }
  0x1a   :  { %52 = dma.hbm_to_vmem [thread:$0]  %s3919_s19, 512, %s47_s25, [#allocation6], %s3135_s29, %s3135_s29, %s3136_s0  }
  0x1b   :  { %p2935_p9 = pnand %p2934_p8, %p2928_p5 }
  0x1d   :  { %2938 = shalt.err (!%p2935_p9)
}
  0x1e   :  { %76 = dma.hbm_to_vmem [thread:$0]  %s3904_s5, 64, %s74_s27, [#allocation9]  }
  0x1f   :  { %s3137_s22 = smov [#allocation11]  }
  0x20   :  { %s94_s23 = sshll.u32 %s3137_s22, 4  ;;  %s95_s23 = int_to_ptr.vmem [resolvable:$true] %s94_s23 }
  0x21   :  { %s2947_s24 = scalar_lea.vmem %s95_s23, 2048  ;;  %p2952_p11 = scmp.lt.s32.totalorder %s95_s23, %s95_s23 }
  0x22   :  { %p2948_p10 = scmp.ne.s32.totalorder %s95_s23, %s2947_s24  ;;  %p2953_p12 = scmp.lt.s32.totalorder %s2947_s24, %s2947_s24 }
  0x24   :  { %p2954_p13 = por %p2953_p12, %p2952_p11 }
  0x26   :  { %p2955_p0 = pnand %p2954_p13, %p2948_p10 }
  0x28   :  { %2958 = shalt.err (!%p2955_p0)
}
  0x29   :  { %s3138_s25 = smov 256   ;;  %s3139_s26 = smov 16  }
  0x2a   :  { %100 = dma.hbm_to_vmem [thread:$0]  %s3907_s8, 2048, %s95_s23, [#allocation12], %s3138_s25, %s3138_s25, %s3139_s26  }
  0x2b   :  { %s3140_s5 = smov [#allocation14]   ;;  %s3141_s18 = smov [#allocation2]  }
  0x2c   :  { %s119_s27 = sshll.u32 %s3140_s5, 4  ;;  %s34_s19 = sshll.u32 %s3141_s18, 4  ;;  %s120_s27 = int_to_ptr.vmem [resolvable:$true] %s119_s27  ;;  %s35_s19 = int_to_ptr.vmem [resolvable:$true] %s34_s19 }
  0x2d   :  { %s2967_s1 = scalar_lea.vmem %s120_s27, 16  ;;  %s2971_s20 = scalar_lea.vmem %s120_s27, 32 }
  0x2e   :  { %p2968_p1 = scmp.ne.s32.totalorder %s120_s27, %s2967_s1  ;;  %p2972_p2 = scmp.lt.s32.totalorder %s120_s27, %s120_s27 }
  0x2f   :  { %p2973_p3 = scmp.lt.s32.totalorder %s2971_s20, %s2967_s1 }
  0x31   :  { %p2974_p4 = por %p2973_p3, %p2972_p2 }
  0x33   :  { %p2975_p5 = pnand %p2974_p4, %p2968_p1 }
  0x35   :  { %2978 = shalt.err (!%p2975_p5)
}
  0x36   :  { %122 = dma.hbm_to_vmem [thread:$0]  %s3910_s11, 16, %s120_s27, [#allocation15]  }
  0x37   :  { %s2987_s24 = scalar_lea.vmem %s35_s19, 512  ;;  %p2992_p7 = scmp.lt.s32.totalorder %s35_s19, %s35_s19 }
  0x38   :  { %p2988_p6 = scmp.ne.s32.totalorder %s35_s19, %s2987_s24  ;;  %p2993_p8 = scmp.lt.s32.totalorder %s2987_s24, %s2987_s24 }
  0x3a   :  { %p2994_p9 = por %p2993_p8, %p2992_p7 }
  0x3c   :  { %p2995_p10 = pnand %p2994_p9, %p2988_p6 }
  0x3e   :  { %2998 = shalt.err (!%p2995_p10)
}
  0x3f   :  { %s3920_s28 = sld [smem:[#allocation27_spill]]  ;;  %s3142_s30 = smov [#allocation7]  }
  0x40   :  { %s59_s5 = sshll.u32 %s3142_s30, 4  ;;  %s3143_s18 = smov [#allocation10]   ;;  %s60_s5 = int_to_ptr.vmem [resolvable:$true] %s59_s5 }
  0x41   :  { %s85_s11 = sshll.u32 %s3143_s18, 4  ;;  %s3007_s27 = scalar_lea.vmem %s60_s5, 32  ;;  %s86_s11 = int_to_ptr.vmem [resolvable:$true] %s85_s11 }
  0x42   :  { %p3008_p11 = scmp.ne.s32.totalorder %s60_s5, %s3007_s27  ;;  %p3012_p12 = scmp.lt.s32.totalorder %s60_s5, %s60_s5 }
  0x43   :  { %p3013_p13 = scmp.lt.s32.totalorder %s3007_s27, %s3007_s27 }
  0x45   :  { %40 = dma.hbm_to_vmem [thread:$0]  %s3920_s28, 512, %s35_s19, [#allocation3], %s3135_s29, %s3135_s29, %s3136_s0  }
  0x46   :  { %p3014_p0 = por %p3013_p13, %p3012_p12 }
  0x48   :  { %p3015_p1 = pnand %p3014_p0, %p3008_p11 }
  0x4a   :  { %3018 = shalt.err (!%p3015_p1)
}
  0x4b   :  { %62 = dma.hbm_to_vmem [thread:$0]  %s3901_s2, 32, %s60_s5, [#allocation6]  }
  0x4c   :  { %s3027_s21 = scalar_lea.vmem %s86_s11, 128  ;;  %p3032_p3 = scmp.lt.s32.totalorder %s86_s11, %s86_s11 }
  0x4d   :  { %p3028_p2 = scmp.ne.s32.totalorder %s86_s11, %s3027_s21  ;;  %p3033_p4 = scmp.lt.s32.totalorder %s3027_s21, %s3027_s21 }
  0x4f   :  { %p3034_p5 = por %p3033_p4, %p3032_p3 }
  0x51   :  { %p3035_p6 = pnand %p3034_p5, %p3028_p2 }
  0x53   :  { %3038 = shalt.err (!%p3035_p6)
}
  0x54   :  { %88 = dma.hbm_to_vmem [thread:$0]  %s3906_s7, 128, %s86_s11, [#allocation9]  }
  0x55   :  { %s3144_s24 = smov [#allocation13]   ;;  %s3145_s23 = smov [#allocation16]  }
  0x56   :  { %s107_s8 = sshll.u32 %s3144_s24, 4  ;;  %s128_s28 = sshll.u32 %s3145_s23, 4  ;;  %s108_s8 = int_to_ptr.vmem [resolvable:$true] %s107_s8  ;;  %s129_s28 = int_to_ptr.vmem [resolvable:$true] %s128_s28 }
  0x57   :  { %s3047_s30 = scalar_lea.vmem %s108_s8, 32  ;;  %p3052_p8 = scmp.lt.s32.totalorder %s108_s8, %s108_s8 }
  0x58   :  { %p3048_p7 = scmp.ne.s32.totalorder %s108_s8, %s3047_s30  ;;  %p3053_p9 = scmp.lt.s32.totalorder %s3047_s30, %s3047_s30 }
  0x5a   :  { %p3054_p10 = por %p3053_p9, %p3052_p8 }
  0x5c   :  { %p3055_p11 = pnand %p3054_p10, %p3048_p7 }
  0x5e   :  { %3058 = shalt.err (!%p3055_p11)
}
  0x5f   :  { %110 = dma.hbm_to_vmem [thread:$0]  %s3908_s9, 32, %s108_s8, [#allocation12]  }
  0x60   :  { %s3067_s18 = scalar_lea.vmem %s129_s28, 2048  ;;  %p3072_p13 = scmp.lt.s32.totalorder %s129_s28, %s129_s28 }
  0x61   :  { %p3068_p12 = scmp.ne.s32.totalorder %s129_s28, %s3067_s18  ;;  %p3073_p0 = scmp.lt.s32.totalorder %s3067_s18, %s3067_s18 }
  0x63   :  { %p3074_p1 = por %p3073_p0, %p3072_p13 }
  0x65   :  { %p3075_p2 = pnand %p3074_p1, %p3068_p12 }
  0x67   :  { %3078 = shalt.err (!%p3075_p2)
}
  0x68   :  { %134 = dma.hbm_to_vmem [thread:$0]  %s3911_s12, 2048, %s129_s28, [#allocation15], %s3138_s25, %s3138_s25, %s3139_s26  }
  0x69   :  { %s3146_s27 = smov [#allocation17]  }
  0x6a   :  { %s142_s1 = sshll.u32 %s3146_s27, 4  ;;  %s143_s1 = int_to_ptr.vmem [resolvable:$true] %s142_s1 }
  0x6b   :  { %s3087_s20 = scalar_lea.vmem %s143_s1, 6144  ;;  %p3092_p4 = scmp.lt.s32.totalorder %s143_s1, %s143_s1 }
  0x6c   :  { %p3088_p3 = scmp.ne.s32.totalorder %s143_s1, %s3087_s20  ;;  %p3093_p5 = scmp.lt.s32.totalorder %s3087_s20, %s3087_s20 }
  0x6e   :  { %p3094_p6 = por %p3093_p5, %p3092_p4 }
  0x70   :  { %p3095_p7 = pnand %p3094_p6, %p3088_p3 }
  0x72   :  { %3098 = shalt.err (!%p3095_p7)
}
  0x73   :  { %148 = dma.hbm_to_vmem [thread:$0]  %s3913_s14, 6144, %s143_s1, [#allocation18], %s3135_s29, %s3135_s29, %s3136_s0  }
  0x74   :  { %3119 = dma.done.wait [#allocation3], 512  }
  0x75   :  { %3120 = vsyncadd [#allocation3], 4294966784 }
  0x76   :  { %3121 = dma.done.wait [#allocation6], 544  }
  0x77   :  { %3122 = vsyncadd [#allocation6], 4294966752 }
  0x78   :  { %3123 = dma.done.wait [#allocation9], 192  }
  0x79   :  { %3124 = vsyncadd [#allocation9], 4294967104 }
  0x7a   :  { %3125 = dma.done.wait [#allocation12], 2080  }
  0x7b   :  { %3126 = vsyncadd [#allocation12], 4294965216 }
  0x7c   :  { %3127 = dma.done.wait [#allocation15], 2064  }
  0x7d   :  { %3128 = vsyncadd [#allocation15], 4294965232 }
  0x7e   :  { %3129 = dma.done.wait [#allocation18], 6144  }
  0x7f   :  { %3130 = vsyncadd [#allocation18], 4294961152  ;;  %v3147_v0 = vmov 0.0   ;;  %vm3148_vm0 = vmmov 0   ;;  %v3292_v1 = vld [vmem:[#allocation2 + $0x18] sm:$0xff]  ;;  %v3294_v2 = vld [vmem:[#allocation2 + $0x10] sm:$0xff] }
  0x80   :  { %2613 = vmatprep.subr.mxu0 %v3147_v0  ;;  %2621 = vmatprep.mubr.msk.f32.mxu0 %vm3148_vm0, %v3147_v0  ;;  %v203_v3 = vld [vmem:[%s3903_s4 + $0x38] sm:$0xff]  ;;  %v3301_v4 = vld [vmem:[#allocation2 + $0x8] sm:$0xff]  ;;  %v202_v5 = vld [vmem:[%s3903_s4 + $0x30] sm:$0xff]  ;;  %vm205_vm1 = vcmask 261120   ;;  %vm279_vm2 = vcmask 523264   ;;  %vm357_vm3 = vcmask 1043456  }
  0x81   :  { %2624 = vmatprep.subr.mxu1 %v3147_v0  ;;  %2640 = vmatprep.mubr.msk.f32.mxu1 %vm3148_vm0, %v3147_v0  ;;  %v201_v6 = vld [vmem:[%s3903_s4 + $0x28] sm:$0xff]  ;;  %v3312_v7 = vld [vmem:[#allocation2] sm:$0xff]  ;;  %v199_v10 = vld [vmem:[%s3903_s4 + $0x18] sm:$0xff]  ;;  %vm353_vm4 = vcmask 31744   ;;  %vm431_vm5 = vcmask 15360   ;;  %vm444_vm6 = vcmask 1041408  }
  0x82   :  { %2614 = vmatpush3.msra.mxu0 %v3292_v1  ;;  %2625 = vmatpush3.msra.mxu1 %v203_v3  ;;  %v3315_v8 = vld [vmem:[#allocation7] sm:$0x3]  ;;  %v198_v11 = vld [vmem:[%s3903_s4 + $0x10] sm:$0xff]  ;;  %v197_v12 = vld [vmem:[%s3903_s4 + $0x8] sm:$0xff]  ;;  %vm1019_vm8 = vcmask 1040384   ;;  %vm1036_vm10 = vcmask 1046528  }
  0x83   :  { %2615 = vmatprep.subr.mxu0 %v3147_v0  ;;  %2626 = vmatprep.subr.mxu1 %v3147_v0  ;;  %v200_v9 = vld [vmem:[%s3903_s4 + $0x20] sm:$0xff]  ;;  %v3369_v21 = vld [vmem:[%s3902_s3 + $0x8] sm:$0xff]  ;;  %v3375_v22 = vld [vmem:[%s3902_s3 + $0x10] sm:$0xff]  ;;  %vm1346_vm13 = vcmask 64512  }
  0x84   :  { %2616 = vmatpush3.msra.mxu0 %v3294_v2  ;;  %2627 = vmatpush3.msra.mxu1 %v202_v5  ;;  %v196_v13 = vld [vmem:[%s3903_s4] sm:$0xff]  ;;  %v3386_v24 = vld [vmem:[%s3902_s3 + $0x18] sm:$0xff]  ;;  %v862_v48 = vld [vmem:[#allocation11 + $0x60] sm:$0xff] }
  0x85   :  { %2617 = vmatprep.subr.mxu0 %v3147_v0  ;;  %2628 = vmatprep.subr.mxu1 %v3147_v0  ;;  %v204_v16 = vld [vmem:[#allocation8] sm:$0xf]  ;;  %v865_v44 = vld [vmem:[#allocation11 + $0x78] sm:$0xff]  ;;  %v863_v47 = vld [vmem:[#allocation11 + $0x68] sm:$0xff] }
  0x86   :  { %2618 = vmatpush3.msra.mxu0 %v3301_v4  ;;  %2629 = vmatpush3.msra.mxu1 %v201_v6  ;;  %v3362_v19 = vld [vmem:[%s3902_s3] sm:$0xff]  ;;  %v859_v51 = vld [vmem:[#allocation11 + $0x48] sm:$0xff]  ;;  %v858_v52 = vld [vmem:[#allocation11 + $0x40] sm:$0xff]  ;;  %s3149_s3 = smov 64  }
  0x87   :  { %2619 = vmatprep.subr.mxu0 %v3147_v0  ;;  %2630 = vmatprep.subr.mxu1 %v3147_v0  ;;  %v864_v45 = vld [vmem:[#allocation11 + $0x70] sm:$0xff]  ;;  %v861_v49 = vld [vmem:[#allocation11 + $0x58] sm:$0xff]  ;;  %v855_v55 = vld [vmem:[#allocation11 + $0x28] sm:$0xff] }
  0x88   :  { %2620 = vmatpush3.msra.mxu0 %v3312_v7  ;;  %2631 = vmatpush3.msra.mxu1 %v200_v9  ;;  %v860_v50 = vld [vmem:[#allocation11 + $0x50] sm:$0xff]  ;;  %v857_v53 = vld [vmem:[#allocation11 + $0x38] sm:$0xff]  ;;  %v854_v56 = vld [vmem:[#allocation11 + $0x20] sm:$0xff] }
  0x89   :  { %2622 = vmatmul.mubr.msk.f32.vlgmr.msra.gmra.mxu0 %vm205_vm1, %v3315_v8  ;;  %2632 = vmatprep.subr.mxu1 %v3147_v0  ;;  %v856_v54 = vld [vmem:[#allocation11 + $0x30] sm:$0xff]  ;;  %v853_v57 = vld [vmem:[#allocation11 + $0x18] sm:$0xff]  ;;  %v851_v59 = vld [vmem:[#allocation11 + $0x8] sm:$0xff] }
  0x8a   :  { %2643 = vmatprep.subr.mxu0 %v3147_v0  ;;  %2633 = vmatpush3.msra.mxu1 %v199_v10  ;;  %v852_v58 = vld [vmem:[#allocation11 + $0x10] sm:$0xff]  ;;  %v850_v60 = vld [vmem:[#allocation11] sm:$0xff] }
  0x8b   :  { %2645 = vmatprep.mubr.msk.f32.mxu0 %vm3148_vm0, %v3147_v0  ;;  %2634 = vmatprep.subr.mxu1 %v3147_v0  ;;  %v3434_v61 = vld [vmem:[#allocation5] sm:$0xff]  ;;  %v3440_v62 = vld [vmem:[#allocation5 + $0x8] sm:$0xff]  ;;  %v3445_v63 = vld [vmem:[#allocation5 + $0x10] sm:$0xff] }
  0x8c   :  { %2635 = vmatpush3.msra.mxu1 %v198_v11  ;;  %2644 = vmatpush3.msk.msra.mxu0 %vm357_vm3, %v204_v16 }
  0x8d   :  { %2636 = vmatprep.subr.mxu1 %v3147_v0 }
  0x8e   :  { %2637 = vmatpush3.msra.mxu1 %v197_v12 }
  0x8f   :  { %2638 = vmatprep.subr.mxu1 %v3147_v0 }
  0x90   :  { %2639 = vmatpush3.msra.mxu1 %v196_v13 }
  0x91   :  { %2667 = vmatprep.subr.mxu1 %v3147_v0 }
 0x149   :  { %v275_v14 = vpop.f32.mrf.mxu0 }
 0x14a   :  { %2641 = vmatmul.mubr.msk.f32.vlgmr.msra.gmra.mxu1 %vm279_vm2, %v275_v14 }
 0x14b   :  { %v2623_v15 = vpop.f32.mrf.mxu0  ;;  %2668 = vmatpush3.msra.mxu1 %v203_v3  ;;  %2683 = vmatprep.mubr.msk.f32.mxu1 %vm3148_vm0, %v3147_v0 }
 0x14c   :  { %2669 = vmatprep.subr.mxu1 %v3147_v0 }
 0x14d   :  { %2670 = vmatpush3.msra.mxu1 %v202_v5 }
 0x14e   :  { %2671 = vmatprep.subr.mxu1 %v3147_v0 }
 0x14f   :  { %2672 = vmatpush3.msra.mxu1 %v201_v6 }
 0x150   :  { %2673 = vmatprep.subr.mxu1 %v3147_v0 }
 0x151   :  { %2674 = vmatpush3.msra.mxu1 %v200_v9  ;;  %v866_v9 = vld [vmem:[#allocation13] sm:$0x3] }
 0x152   :  { %2675 = vmatprep.subr.mxu1 %v3147_v0 }
 0x153   :  { %2676 = vmatpush3.msra.mxu1 %v199_v10 }
 0x154   :  { %2677 = vmatprep.subr.mxu1 %v3147_v0 }
 0x155   :  { %2678 = vmatpush3.msra.mxu1 %v198_v11 }
 0x156   :  { %2679 = vmatprep.subr.mxu1 %v3147_v0 }
 0x157   :  { %2680 = vmatpush3.msra.mxu1 %v197_v12 }
 0x158   :  { %2681 = vmatprep.subr.mxu1 %v3147_v0 }
 0x159   :  { %2682 = vmatpush3.msra.mxu1 %v196_v13 }
 0x15a   :  { %1104 = vmatprep.subr.mxu1 %v3147_v0 }
 0x20a   :  { %v349_v17 = vpop.f32.mrf.mxu1 }
 0x20b   :  { %2646 = vmatmul.mubr.msk.f32.vlgmr.msra.gmra.mxu0 %vm353_vm4, %v349_v17 }
 0x20c   :  { %v2642_v18 = vpop.f32.mrf.mxu1  ;;  %2650 = vmatprep.mubr.msk.f32.mxu0 %vm431_vm5, %v3362_v19 }
 0x2cb   :  { %v427_v20 = vpop.f32.mrf.mxu0 }
 0x2cc   :  { %2648 = vmatprep.subr.msk.mxu0 %vm444_vm6, %v427_v20 }
 0x2cd   :  { %v2647_v23 = vpop.f32.mrf.mxu0  ;;  %2649 = vmatpush3.msk.msra.mxu0 %vm444_vm6, %v427_v20 }
 0x2ce   :  { %2651 = vmatmul.mubr.msk.f32.vlgmr.msra.gmra.mxu0 %vm431_vm5, %v3369_v21  ;;  %2656 = vmatprep.subr.mxu0 %v3147_v0 }
 0x2cf   :  { %2653 = vmatprep.mubr.msk.f32.mxu0 %vm431_vm5, %v3375_v22 }
 0x2d2   :  { %2654 = vmatmul.mubr.msk.f32.gmra.mxu0 %vm431_vm5, %v3386_v24 }
 0x2d3   :  { %2664 = vmatprep.mubr.msk.f32.mxu0 %vm3148_vm0, %v3147_v0 }
 0x38e   :  { %v2652_v25 = vpop.f32.mrf.mxu0 }
 0x38f   :  { %v3396_v30 = vsub.f32 %v3301_v4, %v2652_v25 }
 0x390   :  { %v514_v26 = vpop.f32.mrf.mxu0 }
 0x391   :  { %v3404_v33 = vsub.f32 %v3312_v7, %v514_v26  ;;  %v538_v35 = vmul.f32 %v3396_v30, %v3396_v30 }
 0x392   :  { %v2655_v27 = vpop.f32.mrf.mxu0 }
 0x393   :  { %v3393_v28 = vsub.f32 %v3292_v1, %v2655_v27  ;;  %v537_v36 = vmul.f32 %v3404_v33, %v3404_v33  ;;  %v3450_v1 = vld [vmem:[#allocation5 + $0x18] sm:$0xff] }
 0x394   :  { %v524_v29 = vpop.f32.mrf.mxu0 }
 0x395   :  { %v540_v31 = vmul.f32 %v3393_v28, %v3393_v28  ;;  %v3401_v32 = vsub.f32 %v3294_v2, %v524_v29  ;;  %v868_v2 = vlaneseq }
 0x397   :  { %v539_v34 = vmul.f32 %v3401_v32, %v3401_v32  ;;  %2657 = vmatpush3.msra.mxu0 %v540_v31  ;;  %v3456_v4 = vshrl.u32 %v868_v2, 7  ;;  %v1081_v2 = vld [vmem:[%s3909_s10 + $0x90] sm:$0xff] }
 0x398   :  { %2658 = vmatprep.subr.mxu0 %v3147_v0 }
 0x399   :  { %2659 = vmatpush3.msra.mxu0 %v539_v34  ;;  %v870_v6 = vsub.s32 0, %v3456_v4  ;;  %v874_v10 = vsub.s32 1, %v3456_v4 }
 0x39a   :  { %2660 = vmatprep.subr.mxu0 %v3147_v0 }
 0x39b   :  { %2661 = vmatpush3.msra.mxu0 %v538_v35  ;;  %v871_v11 = vrot.slane %v866_v9, %v870_v6  ;;  %v3464_v13 = vrot.slane %v866_v9, %v874_v10 }
 0x39c   :  { %2662 = vmatprep.subr.mxu0 %v3147_v0 }
 0x39d   :  { %2663 = vmatpush3.msra.mxu0 %v537_v36 }
 0x39e   :  { %2665 = vmatmul.mubr.msk.f32.vlgmr.msra.gmra.mxu0 %vm205_vm1, %v3315_v8  ;;  %2686 = vmatprep.subr.mxu0 %v3147_v0 }
 0x39f   :  { %2687 = vmatpush3.msk.msra.mxu0 %vm357_vm3, %v204_v16  ;;  %2688 = vmatprep.mubr.msk.f32.mxu0 %vm3148_vm0, %v3147_v0 }
 0x45e   :  { %v607_v37 = vpop.f32.mrf.mxu0 }
 0x45f   :  { %2684 = vmatmul.mubr.msk.f32.vlgmr.msra.gmra.mxu1 %vm279_vm2, %v607_v37 }
 0x460   :  { %v2666_v38 = vpop.f32.mrf.mxu0 }
 0x51f   :  { %v680_v39 = vpop.f32.mrf.mxu1 }
 0x520   :  { %v681_v40 = vadd.f32 1e-05, %v680_v39 }
 0x521   :  { %v2685_v41 = vpop.f32.mrf.mxu1 }
 0x522   :  { %2895 = vrsqrt.f32 %v681_v40  ;;  %v1078_v41 = vld [vmem:[%s3909_s10 + $0x78] sm:$0xff] }
 0x523   :  { %1105 = vmatpush1.msra.mxu1 %v1078_v41 }
 0x524   :  { %1106 = vmatprep.subr.mxu1 %v3147_v0 }
 0x52f   :  { %v2896_v42 = vpop.eup %2895 }
 0x530   :  { %2689 = vmatmul.mubr.msk.f32.vlgmr.msra.gmra.mxu0 %vm353_vm4, %v2896_v42  ;;  %v1077_v42 = vld [vmem:[%s3909_s10 + $0x70] sm:$0xff] }
 0x531   :  { %2693 = vmatprep.mubr.msk.f32.mxu0 %vm431_vm5, %v3362_v19  ;;  %1107 = vmatpush1.msra.mxu1 %v1077_v42 }
 0x532   :  { %1108 = vmatprep.subr.mxu1 %v3147_v0 }
 0x5f0   :  { %v754_v43 = vpop.f32.mrf.mxu0 }
 0x5f1   :  { %2691 = vmatprep.subr.msk.mxu0 %vm444_vm6, %v754_v43 }
 0x5f2   :  { %v2690_v46 = vpop.f32.mrf.mxu0  ;;  %2692 = vmatpush3.msk.msra.mxu0 %vm444_vm6, %v754_v43  ;;  %v1075_v43 = vld [vmem:[%s3909_s10 + $0x60] sm:$0xff] }
 0x5f3   :  { %2694 = vmatmul.mubr.msk.f32.vlgmr.msra.gmra.mxu0 %vm431_vm5, %v3369_v21  ;;  %906 = vmatprep.subr.mxu0 %v865_v44  ;;  %v1074_v44 = vld [vmem:[%s3909_s10 + $0x58] sm:$0xff]  ;;  %v1072_v46 = vld [vmem:[%s3909_s10 + $0x48] sm:$0xff] }
 0x5f4   :  { %907 = vmatpush1.msra.mxu0 %v864_v45  ;;  %2696 = vmatprep.mubr.msk.f32.mxu0 %vm431_vm5, %v3375_v22  ;;  %v1073_v45 = vld [vmem:[%s3909_s10 + $0x50] sm:$0xff] }
 0x5f5   :  { %908 = vmatprep.subr.mxu0 %v863_v47  ;;  %v1071_v47 = vld [vmem:[%s3909_s10 + $0x40] sm:$0xff] }
 0x5f6   :  { %909 = vmatpush1.msra.mxu0 %v862_v48  ;;  %v1070_v48 = vld [vmem:[%s3909_s10 + $0x38] sm:$0xff] }
 0x5f7   :  { %2697 = vmatmul.mubr.msk.f32.gmra.mxu0 %vm431_vm5, %v3386_v24  ;;  %910 = vmatprep.subr.mxu0 %v861_v49  ;;  %v1069_v49 = vld [vmem:[%s3909_s10 + $0x30] sm:$0xff] }
 0x5f8   :  { %911 = vmatpush1.msra.mxu0 %v860_v50  ;;  %954 = vmatprep.mubr.f32.mxu0 %v3147_v0  ;;  %v1068_v50 = vld [vmem:[%s3909_s10 + $0x28] sm:$0xff] }
 0x5f9   :  { %912 = vmatprep.subr.mxu0 %v859_v51  ;;  %v1067_v51 = vld [vmem:[%s3909_s10 + $0x20] sm:$0xff] }
 0x5fa   :  { %913 = vmatpush1.msra.mxu0 %v858_v52  ;;  %v1066_v52 = vld [vmem:[%s3909_s10 + $0x18] sm:$0xff] }
 0x5fb   :  { %914 = vmatprep.subr.mxu0 %v857_v53  ;;  %v1065_v53 = vld [vmem:[%s3909_s10 + $0x10] sm:$0xff] }
 0x5fc   :  { %915 = vmatpush1.msra.mxu0 %v856_v54  ;;  %v1064_v54 = vld [vmem:[%s3909_s10 + $0x8] sm:$0xff] }
 0x5fd   :  { %916 = vmatprep.subr.mxu0 %v855_v55  ;;  %v1063_v55 = vld [vmem:[%s3909_s10] sm:$0xff] }
 0x5fe   :  { %917 = vmatpush1.msra.mxu0 %v854_v56  ;;  %v1086_v56 = vld [vmem:[%s3909_s10 + $0xb8] sm:$0xff] }
 0x5ff   :  { %918 = vmatprep.subr.mxu0 %v853_v57  ;;  %v1085_v57 = vld [vmem:[%s3909_s10 + $0xb0] sm:$0xff] }
 0x600   :  { %919 = vmatpush1.msra.mxu0 %v852_v58  ;;  %v1084_v58 = vld [vmem:[%s3909_s10 + $0xa8] sm:$0xff] }
 0x601   :  { %920 = vmatprep.subr.mxu0 %v851_v59  ;;  %v1083_v59 = vld [vmem:[%s3909_s10 + $0xa0] sm:$0xff] }
 0x602   :  { %921 = vmatpush1.msra.mxu0 %v850_v60  ;;  %v1082_v60 = vld [vmem:[%s3909_s10 + $0x98] sm:$0xff] }
 0x603   :  { %2405 = vmatmul.mubr.msk.f32.vlgmr.msra.gmra.mxu0 %vm279_vm2, %v3434_v61  ;;  %2699 = vmatprep.subr.mxu0 %v3147_v0 }
 0x604   :  { %960 = vmatprep.mubr.f32.mxu0 %v3147_v0 }
 0x607   :  { %2406 = vmatmul.mubr.msk.f32.gmra.mxu0 %vm279_vm2, %v3440_v62 }
 0x608   :  { %966 = vmatprep.mubr.f32.mxu0 %v3147_v0 }
 0x60b   :  { %2407 = vmatmul.mubr.msk.f32.gmra.mxu0 %vm279_vm2, %v3445_v63 }
 0x60c   :  { %972 = vmatprep.mubr.f32.mxu0 %v3147_v0 }
 0x60f   :  { %2408 = vmatmul.mubr.msk.f32.gmra.mxu0 %vm279_vm2, %v3450_v1 }
 0x610   :  { %2707 = vmatprep.mubr.msk.f32.mxu0 %vm3148_vm0, %v3147_v0 }
 0x6b3   :  { %v2695_v3 = vpop.f32.mrf.mxu0 }
 0x6b4   :  { %v3477_v25 = vmul.f32 %v2695_v3, %v3396_v30  ;;  %v1080_v3 = vld [vmem:[%s3909_s10 + $0x88] sm:$0xff] }
 0x6b5   :  { %v827_v5 = vpop.f32.mrf.mxu0 }
 0x6b6   :  { %v3467_v15 = vmul.f32 %v827_v5, %v3404_v33  ;;  %v1079_v5 = vld [vmem:[%s3909_s10 + $0x80] sm:$0xff] }
 0x6b7   :  { %v2698_v7 = vpop.f32.mrf.mxu0 }
 0x6b8   :  { %v3497_v39 = vmul.f32 %v2698_v7, %v3393_v28  ;;  %v1076_v28 = vld [vmem:[%s3909_s10 + $0x68] sm:$0xff] }
 0x6b9   :  { %v837_v12 = vpop.f32.mrf.mxu0  ;;  %1109 = vmatpush1.msra.mxu1 %v1076_v28 }
 0x6ba   :  { %v3487_v34 = vmul.f32 %v837_v12, %v3401_v32  ;;  %1110 = vmatprep.subr.mxu1 %v3147_v0 }
 0x6bb   :  { %1111 = vmatpush1.msra.mxu1 %v1075_v43 }
 0x6bc   :  { %1112 = vmatprep.subr.mxu1 %v3147_v0 }
 0x6bd   :  { %1113 = vmatpush1.msra.mxu1 %v1074_v44 }
 0x6be   :  { %1114 = vmatprep.subr.mxu1 %v3147_v0 }
 0x6bf   :  { %1115 = vmatpush1.msra.mxu1 %v1073_v45 }
 0x6c0   :  { %1116 = vmatprep.subr.mxu1 %v3147_v0 }
 0x6c1   :  { %1117 = vmatpush1.msra.mxu1 %v1072_v46 }
 0x6c2   :  { %1118 = vmatprep.subr.mxu1 %v3147_v0 }
 0x6c3   :  { %v956_v14 = vpop.f32.mrf.mxu0  ;;  %1119 = vmatpush1.msra.mxu1 %v1071_v47 }
 0x6c4   :  { %v957_v16 = vadd.f32 %v956_v14, %v871_v11  ;;  %1120 = vmatprep.subr.mxu1 %v3147_v0 }
 0x6c5   :  { %v958_v17 = vpop.f32.mrf.mxu0  ;;  %1121 = vmatpush1.msra.mxu1 %v1070_v48 }
 0x6c6   :  { %v3470_v18 = vadd.f32 %v958_v17, %v3464_v13  ;;  %987 = vrot.lane.b32.xlu0 %v957_v16, %s3149_s3  ;;  %v3474_v20 = vmul.f32 %v957_v16, %v3467_v15  ;;  %1122 = vmatprep.subr.mxu1 %v3147_v0 }
 0x6c7   :  { %v962_v23 = vpop.f32.mrf.mxu0  ;;  %1123 = vmatpush1.msra.mxu1 %v1069_v49 }
 0x6c8   :  { %v963_v26 = vadd.f32 %v962_v23, %v871_v11  ;;  %1124 = vmatprep.subr.mxu1 %v3147_v0 }
 0x6c9   :  { %v964_v27 = vpop.f32.mrf.mxu0  ;;  %1125 = vmatpush1.msra.mxu1 %v1068_v50 }
 0x6ca   :  { %v3480_v29 = vadd.f32 %v964_v27, %v3464_v13  ;;  %989 = vrot.lane.b32.xlu0 %v963_v26, %s3149_s3  ;;  %v3484_v31 = vmul.f32 %v963_v26, %v3477_v25  ;;  %1126 = vmatprep.subr.mxu1 %v3147_v0 }
 0x6cb   :  { %v968_v33 = vpop.f32.mrf.mxu0  ;;  %1127 = vmatpush1.msra.mxu1 %v1067_v51 }
 0x6cc   :  { %v969_v35 = vadd.f32 %v968_v33, %v871_v11  ;;  %1128 = vmatprep.subr.mxu1 %v3147_v0 }
 0x6cd   :  { %v970_v36 = vpop.f32.mrf.mxu0  ;;  %1129 = vmatpush1.msra.mxu1 %v1066_v52 }
 0x6ce   :  { %v3490_v37 = vadd.f32 %v970_v36, %v3464_v13  ;;  %991 = vrot.lane.b32.xlu1 %v969_v35, %s3149_s3  ;;  %v3494_v30 = vmul.f32 %v969_v35, %v3487_v34  ;;  %1130 = vmatprep.subr.mxu1 %v3147_v0 }
 0x6cf   :  { %v974_v38 = vpop.f32.mrf.mxu0  ;;  %1131 = vmatpush1.msra.mxu1 %v1065_v53 }
 0x6d0   :  { %v975_v40 = vadd.f32 %v974_v38, %v871_v11  ;;  %1132 = vmatprep.subr.mxu1 %v3147_v0 }
 0x6d1   :  { %1133 = vmatpush1.msra.mxu1 %v1064_v54  ;;  %v976_v51 = vpop.f32.mrf.mxu0 }
 0x6d2   :  { %993 = vrot.lane.b32.xlu1 %v975_v40, %s3149_s3  ;;  %v3501_v32 = vmul.f32 %v975_v40, %v3497_v39  ;;  %1134 = vmatprep.subr.mxu1 %v3147_v0  ;;  %v3621_v52 = vadd.f32 %v976_v51, %v3464_v13 }
 0x6d3   :  { %1135 = vmatpush1.msra.mxu1 %v1063_v55 }
 0x6d4   :  { %1152 = vmatprep.subr.mxu1 %v3147_v0 }
 0x6d5   :  { %1153 = vmatpush2.msra.mxu1 %v1086_v56 }
 0x6d6   :  { %1154 = vmatprep.subr.mxu1 %v3147_v0 }
 0x6d7   :  { %1155 = vmatpush2.msra.mxu1 %v1085_v57 }
 0x6d8   :  { %1156 = vmatprep.subr.mxu1 %v3147_v0 }
 0x6d9   :  { %1157 = vmatpush2.msra.mxu1 %v1084_v58 }
 0x6da   :  { %1158 = vmatprep.subr.mxu1 %v3147_v0 }
 0x6db   :  { %1159 = vmatpush2.msra.mxu1 %v1083_v59 }
 0x6dc   :  { %1160 = vmatprep.subr.mxu1 %v3147_v0 }
 0x6dd   :  { %1161 = vmatpush2.msra.mxu1 %v1082_v60 }
 0x6de   :  { %1162 = vmatprep.subr.mxu1 %v3147_v0 }
 0x6df   :  { %1163 = vmatpush2.msra.mxu1 %v1081_v2 }
 0x6e0   :  { %1164 = vmatprep.subr.mxu1 %v3147_v0 }
 0x6e1   :  { %1165 = vmatpush2.msra.mxu1 %v1080_v3 }
 0x6e2   :  { %1166 = vmatprep.subr.mxu1 %v3147_v0 }
 0x6e3   :  { %1167 = vmatpush2.msra.mxu1 %v1079_v5 }
 0x6e4   :  { %2758 = vmatprep.subr.mxu1 %v3147_v0 }
 0x738   :  { %v988_v7 = vpop.permute.xlu0 %987 }
 0x739   :  { %v999_v9 = vadd.f32 %v988_v7, %v3474_v20 }
 0x73b   :  { %v1007_v11 = vmul.f32 0.2, %v999_v9  ;;  %vm1003_vm7 = vcmp.ge.f32.partialorder %v999_v9, 0.0 }
 0x73c   :  { %v990_v12 = vpop.permute.xlu0 %989 }
 0x73d   :  { %v1000_v14 = vadd.f32 %v990_v12, %v3484_v31  ;;  %v1011_v16 = vsel %vm1003_vm7, %v999_v9, %v1007_v11 }
 0x73e   :  { %1047 = vrot.lane.b32.xlu0 %v1011_v16, %s3149_s3  ;;  %v1016_v17 = vrot.slane %v1011_v16, 1  ;;  %v1020_v23 = vrot.slane %v1011_v16, 7 }
 0x73f   :  { %v1008_v26 = vmul.f32 0.2, %v1000_v14  ;;  %vm1004_vm9 = vcmp.ge.f32.partialorder %v1000_v14, 0.0 }
 0x740   :  { %v992_v27 = vpop.permute.xlu1 %991  ;;  %v1034_v33 = vsel %vm1019_vm8, %v1016_v17, %v1020_v23 }
 0x741   :  { %v1001_v35 = vadd.f32 %v992_v27, %v3494_v30  ;;  %v1012_v36 = vsel %vm1004_vm9, %v1000_v14, %v1008_v26  ;;  %v2409_v14 = vld [vmem:[#allocation14] ss:$0 sm:$0xff] }
 0x742   :  { %1049 = vrot.lane.b32.xlu1 %v1012_v36, %s3149_s3  ;;  %v1021_v20 = vrot.slane %v1012_v36, 7  ;;  %v1037_v38 = vrot.slane %v1012_v36, 1  ;;  %v3662_v36 = vld [vmem:[%s3905_s6 + $0x70] sm:$0xff] }
 0x743   :  { %v1009_v31 = vmul.f32 0.2, %v1001_v35  ;;  %vm1005_vm11 = vcmp.ge.f32.partialorder %v1001_v35, 0.0 }
 0x744   :  { %v994_v40 = vpop.permute.xlu1 %993  ;;  %v1038_v41 = vsel %vm1036_vm10, %v1016_v17, %v1037_v38  ;;  %v1045_v42 = vsel %vm1036_vm10, %v1037_v38, %v1021_v20  ;;  %v1022_v28 = vsel %vm1019_vm8, %v1020_v23, %v1021_v20  ;;  %v3671_v20 = vld [vmem:[%s3905_s6 + $0x68] sm:$0xff]  ;;  %v3678_v38 = vld [vmem:[%s3905_s6 + $0x60] sm:$0xff] }
 0x745   :  { %v1002_v43 = vadd.f32 %v994_v40, %v3501_v32  ;;  %2410 = vmatprep.mubr.msk.f32.mxu1 %vm279_vm2, %v1038_v41  ;;  %v1013_v30 = vsel %vm1005_vm11, %v1001_v35, %v1009_v31  ;;  %v3653_v35 = vld [vmem:[%s3905_s6 + $0x78] sm:$0xff]  ;;  %v3692_v40 = vld [vmem:[%s3905_s6 + $0x50] sm:$0xff]  ;;  %v3699_v41 = vld [vmem:[%s3905_s6 + $0x48] sm:$0xff] }
 0x746   :  { %1051 = vrot.lane.b32.xlu0 %v1013_v30, %s3149_s3  ;;  %v1026_v46 = vrot.slane %v1013_v30, 1  ;;  %v1029_v47 = vrot.slane %v1013_v30, 7  ;;  %v3685_v31 = vld [vmem:[%s3905_s6 + $0x58] sm:$0xff]  ;;  %v1194_v30 = vld [vmem:[%s3905_s6 + $0x28] sm:$0xff] }
 0x747   :  { %v1010_v44 = vmul.f32 0.2, %v1002_v43  ;;  %vm1006_vm12 = vcmp.ge.f32.partialorder %v1002_v43, 0.0 }
 0x748   :  { %v1035_v58 = vsel %vm1019_vm8, %v1026_v46, %v1029_v47 }
 0x749   :  { %v1014_v45 = vsel %vm1006_vm12, %v1002_v43, %v1010_v44  ;;  %v1195_v43 = vld [vmem:[%s3905_s6 + $0x30] sm:$0xff]  ;;  %v1193_v44 = vld [vmem:[%s3905_s6 + $0x20] sm:$0xff] }
 0x74a   :  { %v1030_v48 = vrot.slane %v1014_v45, 7  ;;  %v1041_v49 = vrot.slane %v1014_v45, 1  ;;  %1053 = vrot.lane.b32.xlu1 %v1014_v45, %s3149_s3  ;;  %2224 = vrot.lane.b32.xlu0 %v3470_v18, %s3149_s3  ;;  %v1192_v45 = vld [vmem:[%s3905_s6 + $0x18] sm:$0xff] }
 0x74c   :  { %v1042_v50 = vsel %vm1036_vm10, %v1026_v46, %v1041_v49  ;;  %v1031_v32 = vsel %vm1019_vm8, %v1029_v47, %v1030_v48  ;;  %v1046_v59 = vsel %vm1036_vm10, %v1041_v49, %v1030_v48  ;;  %v1191_v46 = vld [vmem:[%s3905_s6 + $0x10] sm:$0xff]  ;;  %v1190_v47 = vld [vmem:[%s3905_s6 + $0x8] sm:$0xff]  ;;  %v1189_v48 = vld [vmem:[%s3905_s6] sm:$0xff] }
 0x74e   :  { %2226 = vrot.lane.b32.xlu1 %v3480_v29, %s3149_s3  ;;  %2228 = vrot.lane.b32.xlu0 %v3490_v37, %s3149_s3 }
 0x752   :  { %2230 = vrot.lane.b32.xlu1 %v3621_v52, %s3149_s3 }
 0x7b0   :  { %v1048_v53 = vpop.permute.xlu0 %1047 }
 0x7b1   :  { %v1059_v54 = vsel %vm279_vm2, %v1034_v33, %v1048_v53 }
 0x7b2   :  { %1169 = vmatmul.mubr.f32.vlgmr.msra.gmra.mxu1 %v1059_v54 }
 0x7b3   :  { %2411 = vmatprep.mubr.msk.f32.mxu1 %vm279_vm2, %v1045_v42  ;;  %v1197_v42 = vld [vmem:[%s3905_s6 + $0x40] sm:$0xff] }
 0x7b4   :  { %v1050_v55 = vpop.permute.xlu1 %1049 }
 0x7b5   :  { %v1060_v56 = vsel %vm279_vm2, %v1022_v28, %v1050_v55  ;;  %v1196_v28 = vld [vmem:[%s3905_s6 + $0x38] sm:$0xff] }
 0x7b6   :  { %1174 = vmatmul.mubr.f32.gmra.mxu1 %v1060_v56 }
 0x7b7   :  { %2412 = vmatprep.mubr.msk.f32.mxu1 %vm279_vm2, %v1042_v50 }
 0x7b8   :  { %v1052_v57 = vpop.permute.xlu0 %1051 }
 0x7b9   :  { %v1061_v13 = vsel %vm279_vm2, %v1035_v58, %v1052_v57 }
 0x7ba   :  { %1179 = vmatmul.mubr.f32.gmra.mxu1 %v1061_v13 }
 0x7bb   :  { %2413 = vmatprep.mubr.msk.f32.mxu1 %vm279_vm2, %v1046_v59 }
 0x7bc   :  { %v1054_v60 = vpop.permute.xlu1 %1053 }
 0x7bd   :  { %v1062_v2 = vsel %vm279_vm2, %v1031_v32, %v1054_v60  ;;  %v3743_v32 = vld [vmem:[#allocation10] sm:$0xff] }
 0x7be   :  { %1184 = vmatmul.mubr.f32.gmra.mxu1 %v1062_v2 }
 0x7bf   :  { %2766 = vmatprep.mubr.msk.f32.mxu1 %vm3148_vm0, %v3147_v0 }
 0x872   :  { %v1170_v3 = vpop.f32.mrf.mxu1 }
 0x873   :  { %v3646_v33 = vadd.f32 %v2409_v14, %v1170_v3 }
 0x874   :  { %v1172_v5 = vpop.f32.mrf.mxu1 }
 0x876   :  { %v1175_v7 = vpop.f32.mrf.mxu1 }
 0x877   :  { %v3642_v27 = vadd.f32 %v2409_v14, %v1175_v7 }
 0x878   :  { %v1177_v9 = vpop.f32.mrf.mxu1 }
 0x87a   :  { %v1180_v11 = vpop.f32.mrf.mxu1 }
 0x87b   :  { %v3638_v26 = vadd.f32 %v2409_v14, %v1180_v11 }
 0x87c   :  { %v1182_v12 = vpop.f32.mrf.mxu1 }
 0x87e   :  { %v1185_v16 = vpop.f32.mrf.mxu1 }
 0x87f   :  { %v3636_v17 = vadd.f32 %v2409_v14, %v1185_v16 }
 0x880   :  { %v1187_v23 = vpop.f32.mrf.mxu1 }
 0x881   :  { %2700 = vmatpush3.msra.mxu0 %v3636_v17 }
 0x882   :  { %2701 = vmatprep.subr.mxu0 %v3147_v0 }
 0x883   :  { %2702 = vmatpush3.msra.mxu0 %v3638_v26 }
 0x884   :  { %2703 = vmatprep.subr.mxu0 %v3147_v0 }
 0x885   :  { %2704 = vmatpush3.msra.mxu0 %v3642_v27 }
 0x886   :  { %2705 = vmatprep.subr.mxu0 %v3147_v0 }
 0x887   :  { %2706 = vmatpush3.msra.mxu0 %v3646_v33 }
 0x888   :  { %2708 = vmatmul.mubr.msk.f32.vlgmr.msra.gmra.mxu0 %vm205_vm1, %v3315_v8  ;;  %2710 = vmatprep.subr.mxu0 %v3147_v0 }
 0x889   :  { %2711 = vmatpush3.msra.mxu0 %v3653_v35  ;;  %2742 = vmatprep.mubr.msk.f32.mxu0 %vm3148_vm0, %v3147_v0 }
 0x88a   :  { %2712 = vmatprep.subr.mxu0 %v3147_v0 }
 0x88b   :  { %2713 = vmatpush3.msra.mxu0 %v3662_v36 }
 0x88c   :  { %2714 = vmatprep.subr.mxu0 %v3147_v0 }
 0x88d   :  { %2715 = vmatpush3.msra.mxu0 %v3671_v20 }
 0x88e   :  { %2716 = vmatprep.subr.mxu0 %v3147_v0 }
 0x88f   :  { %2717 = vmatpush3.msra.mxu0 %v3678_v38 }
 0x890   :  { %2718 = vmatprep.subr.mxu0 %v3147_v0 }
 0x891   :  { %2719 = vmatpush3.msra.mxu0 %v3685_v31 }
 0x892   :  { %2720 = vmatprep.subr.mxu0 %v3147_v0 }
 0x893   :  { %2721 = vmatpush3.msra.mxu0 %v3692_v40 }
 0x894   :  { %2722 = vmatprep.subr.mxu0 %v3147_v0 }
 0x895   :  { %2723 = vmatpush3.msra.mxu0 %v3699_v41 }
 0x896   :  { %2724 = vmatprep.subr.mxu0 %v3147_v0 }
 0x897   :  { %2725 = vmatpush3.msra.mxu0 %v1197_v42 }
 0x898   :  { %2726 = vmatprep.subr.mxu0 %v3147_v0 }
 0x899   :  { %2727 = vmatpush3.msra.mxu0 %v1196_v28 }
 0x89a   :  { %2728 = vmatprep.subr.mxu0 %v3147_v0 }
 0x89b   :  { %2729 = vmatpush3.msra.mxu0 %v1195_v43 }
 0x89c   :  { %2730 = vmatprep.subr.mxu0 %v3147_v0 }
 0x89d   :  { %2731 = vmatpush3.msra.mxu0 %v1194_v30 }
 0x89e   :  { %2732 = vmatprep.subr.mxu0 %v3147_v0 }
 0x89f   :  { %2733 = vmatpush3.msra.mxu0 %v1193_v44 }
 0x8a0   :  { %2734 = vmatprep.subr.mxu0 %v3147_v0 }
 0x8a1   :  { %2735 = vmatpush3.msra.mxu0 %v1192_v45 }
 0x8a2   :  { %2736 = vmatprep.subr.mxu0 %v3147_v0 }
 0x8a3   :  { %2737 = vmatpush3.msra.mxu0 %v1191_v46 }
 0x8a4   :  { %2738 = vmatprep.subr.mxu0 %v3147_v0 }
 0x8a5   :  { %2739 = vmatpush3.msra.mxu0 %v1190_v47 }
 0x8a6   :  { %2740 = vmatprep.subr.mxu0 %v3147_v0 }
 0x8a7   :  { %2741 = vmatpush3.msra.mxu0 %v1189_v48 }
 0x8a8   :  { %2745 = vmatprep.subr.mxu0 %v3147_v0 }
 0x948   :  { %v1272_v49 = vpop.f32.mrf.mxu0 }
 0x949   :  { %2743 = vmatmul.mubr.f32.vlgmr.msra.gmra.mxu0 %v1272_v49  ;;  %v2038_v49 = vld [vmem:[#allocation17 + $0x178] sm:$0xff] }
 0x94a   :  { %v2709_v50 = vpop.f32.mrf.mxu0  ;;  %2747 = vmatprep.mubr.msk.f32.mxu0 %vm3148_vm0, %v3147_v0  ;;  %2746 = vmatpush3.msra.mxu0 %v3743_v32 }
 0x94b   :  { %v2019_v50 = vld [vmem:[#allocation17 + $0xe0] sm:$0xff] }
 0xa09   :  { %v1342_v51 = vpop.f32.mrf.mxu0 }
 0xa0a   :  { %2748 = vmatmul.mubr.msk.f32.vlgmr.msra.gmra.mxu0 %vm1346_vm13, %v1342_v51  ;;  %v2017_v51 = vld [vmem:[#allocation17 + $0xd0] sm:$0xff] }
 0xa0b   :  { %v2744_v53 = vpop.f32.mrf.mxu0  ;;  %2752 = vmatprep.mubr.msk.f32.mxu0 %vm431_vm5, %v3362_v19 }
 0xa0c   :  { %v2001_v53 = vld [vmem:[#allocation17 + $0x50] sm:$0xff] }
 0xaca   :  { %v1416_v54 = vpop.f32.mrf.mxu0 }
 0xacb   :  { %2750 = vmatprep.subr.msk.mxu0 %vm444_vm6, %v1416_v54 }
 0xacc   :  { %v2749_v55 = vpop.f32.mrf.mxu0  ;;  %2751 = vmatpush3.msk.msra.mxu0 %vm444_vm6, %v1416_v54  ;;  %v2035_v54 = vld [vmem:[#allocation17 + $0x160] sm:$0xff] }
 0xacd   :  { %2753 = vmatmul.mubr.msk.f32.vlgmr.msra.gmra.mxu0 %vm431_vm5, %v3369_v21  ;;  %2769 = vmatprep.subr.mxu0 %v3147_v0  ;;  %v2016_v55 = vld [vmem:[#allocation17 + $0xc8] sm:$0xff] }
 0xace   :  { %2755 = vmatprep.mubr.msk.f32.mxu0 %vm431_vm5, %v3375_v22  ;;  %2770 = vmatpush3.msra.mxu0 %v3653_v35  ;;  %v1835_v35 = vld [vmem:[#allocation16 + $0x68] sm:$0xff] }
 0xacf   :  { %2771 = vmatprep.subr.mxu0 %v3147_v0 }
 0xad0   :  { %2772 = vmatpush3.msra.mxu0 %v3662_v36 }
 0xad1   :  { %2756 = vmatmul.mubr.msk.f32.gmra.mxu0 %vm431_vm5, %v3386_v24  ;;  %2773 = vmatprep.subr.mxu0 %v3147_v0 }
 0xad2   :  { %2774 = vmatpush3.msra.mxu0 %v3671_v20  ;;  %2801 = vmatprep.mubr.msk.f32.mxu0 %vm3148_vm0, %v3147_v0  ;;  %v1834_v20 = vld [vmem:[#allocation16 + $0x60] sm:$0xff] }
 0xad3   :  { %2775 = vmatprep.subr.mxu0 %v3147_v0 }
 0xad4   :  { %2776 = vmatpush3.msra.mxu0 %v3678_v38  ;;  %v1833_v38 = vld [vmem:[#allocation16 + $0x58] sm:$0xff] }
 0xad5   :  { %2777 = vmatprep.subr.mxu0 %v3147_v0 }
 0xad6   :  { %2778 = vmatpush3.msra.mxu0 %v3685_v31  ;;  %v1831_v31 = vld [vmem:[#allocation16 + $0x48] sm:$0xff] }
 0xad7   :  { %2779 = vmatprep.subr.mxu0 %v3147_v0 }
 0xad8   :  { %2780 = vmatpush3.msra.mxu0 %v3692_v40  ;;  %v1830_v40 = vld [vmem:[#allocation16 + $0x40] sm:$0xff] }
 0xad9   :  { %2781 = vmatprep.subr.mxu0 %v3147_v0 }
 0xada   :  { %2782 = vmatpush3.msra.mxu0 %v3699_v41  ;;  %v1829_v41 = vld [vmem:[#allocation16 + $0x38] sm:$0xff] }
 0xadb   :  { %2783 = vmatprep.subr.mxu0 %v3147_v0 }
 0xadc   :  { %2784 = vmatpush3.msra.mxu0 %v1197_v42  ;;  %v1827_v42 = vld [vmem:[#allocation16 + $0x28] sm:$0xff] }
 0xadd   :  { %2785 = vmatprep.subr.mxu0 %v3147_v0 }
 0xade   :  { %2786 = vmatpush3.msra.mxu0 %v1196_v28  ;;  %v1825_v28 = vld [vmem:[#allocation16 + $0x18] sm:$0xff] }
 0xadf   :  { %2787 = vmatprep.subr.mxu0 %v3147_v0 }
 0xae0   :  { %2788 = vmatpush3.msra.mxu0 %v1195_v43  ;;  %v1824_v43 = vld [vmem:[#allocation16 + $0x10] sm:$0xff] }
 0xae1   :  { %2789 = vmatprep.subr.mxu0 %v3147_v0 }
 0xae2   :  { %2790 = vmatpush3.msra.mxu0 %v1194_v30  ;;  %v1823_v30 = vld [vmem:[#allocation16 + $0x8] sm:$0xff] }
 0xae3   :  { %2791 = vmatprep.subr.mxu0 %v3147_v0 }
 0xae4   :  { %2792 = vmatpush3.msra.mxu0 %v1193_v44  ;;  %v2022_v44 = vld [vmem:[#allocation17 + $0xf8] sm:$0xff] }
 0xae5   :  { %2793 = vmatprep.subr.mxu0 %v3147_v0 }
 0xae6   :  { %2794 = vmatpush3.msra.mxu0 %v1192_v45  ;;  %v2006_v45 = vld [vmem:[#allocation17 + $0x78] sm:$0xff] }
 0xae7   :  { %2795 = vmatprep.subr.mxu0 %v3147_v0 }
 0xae8   :  { %2796 = vmatpush3.msra.mxu0 %v1191_v46  ;;  %v2021_v46 = vld [vmem:[#allocation17 + $0xf0] sm:$0xff] }
 0xae9   :  { %2797 = vmatprep.subr.mxu0 %v3147_v0 }
 0xaea   :  { %2798 = vmatpush3.msra.mxu0 %v1190_v47  ;;  %v2005_v47 = vld [vmem:[#allocation17 + $0x70] sm:$0xff] }
 0xaeb   :  { %2799 = vmatprep.subr.mxu0 %v3147_v0 }
 0xaec   :  { %2800 = vmatpush3.msra.mxu0 %v1189_v48  ;;  %v2004_v48 = vld [vmem:[#allocation17 + $0x68] sm:$0xff] }
 0xaed   :  { %2817 = vmatprep.subr.mxu0 %v2038_v49 }
 0xb8d   :  { %v2754_v56 = vpop.f32.mrf.mxu0 }
 0xb8e   :  { %v3786_v60 = vsub.f32 %v3642_v27, %v2754_v56  ;;  %v1837_v27 = vld [vmem:[#allocation16 + $0x78] sm:$0xff]  ;;  %v2000_v56 = vld [vmem:[#allocation17 + $0x48] sm:$0xff] }
 0xb8f   :  { %v1489_v57 = vpop.f32.mrf.mxu0 }
 0xb90   :  { %v3794_v5 = vsub.f32 %v3646_v33, %v1489_v57  ;;  %v1513_v9 = vmul.f32 %v3786_v60, %v3786_v60  ;;  %v1836_v33 = vld [vmem:[#allocation16 + $0x70] sm:$0xff]  ;;  %v2034_v57 = vld [vmem:[#allocation17 + $0x158] sm:$0xff] }
 0xb91   :  { %v2757_v58 = vpop.f32.mrf.mxu0 }
 0xb92   :  { %v3783_v13 = vsub.f32 %v3636_v17, %v2757_v58  ;;  %v1512_v11 = vmul.f32 %v3794_v5, %v3794_v5  ;;  %v2015_v58 = vld [vmem:[#allocation17 + $0xc0] sm:$0xff] }
 0xb93   :  { %v1499_v59 = vpop.f32.mrf.mxu0 }
 0xb94   :  { %v1515_v2 = vmul.f32 %v3783_v13, %v3783_v13  ;;  %v3791_v3 = vsub.f32 %v3638_v26, %v1499_v59  ;;  %v1999_v59 = vld [vmem:[#allocation17 + $0x40] sm:$0xff] }
 0xb96   :  { %v1514_v7 = vmul.f32 %v3791_v3, %v3791_v3  ;;  %2759 = vmatpush3.msra.mxu1 %v1515_v2  ;;  %v2033_v2 = vld [vmem:[#allocation17 + $0x150] sm:$0xff] }
 0xb97   :  { %2760 = vmatprep.subr.mxu1 %v3147_v0 }
 0xb98   :  { %2761 = vmatpush3.msra.mxu1 %v1514_v7  ;;  %v2014_v7 = vld [vmem:[#allocation17 + $0xb8] sm:$0xff] }
 0xb99   :  { %2762 = vmatprep.subr.mxu1 %v3147_v0 }
 0xb9a   :  { %2763 = vmatpush3.msra.mxu1 %v1513_v9  ;;  %v1998_v9 = vld [vmem:[#allocation17 + $0x38] sm:$0xff] }
 0xb9b   :  { %2764 = vmatprep.subr.mxu1 %v3147_v0 }
 0xb9c   :  { %2765 = vmatpush3.msra.mxu1 %v1512_v11  ;;  %v2032_v11 = vld [vmem:[#allocation17 + $0x148] sm:$0xff] }
 0xb9d   :  { %2767 = vmatmul.mubr.msk.f32.vlgmr.msra.gmra.mxu1 %vm205_vm1, %v3315_v8  ;;  %2804 = vmatprep.subr.mxu1 %v3147_v0 }
 0xb9e   :  { %2805 = vmatpush3.msra.mxu1 %v3743_v32  ;;  %2806 = vmatprep.mubr.msk.f32.mxu1 %vm3148_vm0, %v3147_v0  ;;  %v2037_v32 = vld [vmem:[#allocation17 + $0x170] sm:$0xff] }
 0xc5d   :  { %v1582_v12 = vpop.f32.mrf.mxu1 }
 0xc5e   :  { %2802 = vmatmul.mubr.f32.vlgmr.msra.gmra.mxu0 %v1582_v12  ;;  %v2013_v12 = vld [vmem:[#allocation17 + $0xb0] sm:$0xff] }
 0xc5f   :  { %v2768_v14 = vpop.f32.mrf.mxu1  ;;  %2818 = vmatpush3.msra.mxu0 %v2038_v49 }
 0xc60   :  { %2819 = vmatprep.subr.mxu0 %v2037_v32  ;;  %v1997_v14 = vld [vmem:[#allocation17 + $0x30] sm:$0xff] }
 0xc61   :  { %2820 = vmatpush3.msra.mxu0 %v2037_v32 }
 0xd1e   :  { %v1652_v16 = vpop.f32.mrf.mxu0 }
 0xd1f   :  { %v1653_v17 = vadd.f32 1e-05, %v1652_v16  ;;  %v2031_v16 = vld [vmem:[#allocation17 + $0x140] sm:$0xff] }
 0xd20   :  { %v2803_v23 = vpop.f32.mrf.mxu0 }
 0xd21   :  { %2897 = vrsqrt.f32 %v1653_v17  ;;  %v2012_v17 = vld [vmem:[#allocation17 + $0xa8] sm:$0xff] }
 0xd22   :  { %v1996_v23 = vld [vmem:[#allocation17 + $0x28] sm:$0xff] }
 0xd2e   :  { %v2898_v26 = vpop.eup %2897 }
 0xd2f   :  { %2807 = vmatmul.mubr.msk.f32.vlgmr.msra.gmra.mxu1 %vm1346_vm13, %v2898_v26  ;;  %v2030_v26 = vld [vmem:[#allocation17 + $0x138] sm:$0xff] }
 0xd30   :  { %2811 = vmatprep.mubr.msk.f32.mxu1 %vm431_vm5, %v3362_v19  ;;  %v1832_v19 = vld [vmem:[#allocation16 + $0x50] sm:$0xff] }
 0xdef   :  { %v1726_v8 = vpop.f32.mrf.mxu1 }
 0xdf0   :  { %2809 = vmatprep.subr.msk.mxu1 %vm444_vm6, %v1726_v8 }
 0xdf1   :  { %2810 = vmatpush3.msk.msra.mxu1 %vm444_vm6, %v1726_v8  ;;  %v2808_v36 = vpop.f32.mrf.mxu1  ;;  %v2011_v8 = vld [vmem:[#allocation17 + $0xa0] sm:$0xff] }
 0xdf2   :  { %2812 = vmatmul.mubr.msk.f32.vlgmr.msra.gmra.mxu1 %vm431_vm5, %v3369_v21  ;;  %1866 = vmatprep.subr.mxu1 %v1837_v27  ;;  %v1828_v21 = vld [vmem:[#allocation16 + $0x30] sm:$0xff]  ;;  %v1995_v27 = vld [vmem:[#allocation17 + $0x20] sm:$0xff]  ;;  %v1994_v36 = vld [vmem:[#allocation17 + $0x18] sm:$0xff] }
 0xdf3   :  { %1867 = vmatpush1.msra.mxu1 %v1836_v33  ;;  %2814 = vmatprep.mubr.msk.f32.mxu1 %vm431_vm5, %v3375_v22  ;;  %v1826_v22 = vld [vmem:[#allocation16 + $0x20] sm:$0xff]  ;;  %v2029_v33 = vld [vmem:[#allocation17 + $0x130] sm:$0xff] }
 0xdf4   :  { %1868 = vmatprep.subr.mxu1 %v1835_v35  ;;  %v2010_v35 = vld [vmem:[#allocation17 + $0x98] sm:$0xff] }
 0xdf5   :  { %1869 = vmatpush1.msra.mxu1 %v1834_v20  ;;  %v2028_v20 = vld [vmem:[#allocation17 + $0x128] sm:$0xff] }
 0xdf6   :  { %2815 = vmatmul.mubr.msk.f32.gmra.mxu1 %vm431_vm5, %v3386_v24  ;;  %1870 = vmatprep.subr.mxu1 %v1833_v38  ;;  %v1822_v24 = vld [vmem:[#allocation16] sm:$0xff]  ;;  %v2009_v38 = vld [vmem:[#allocation17 + $0x90] sm:$0xff] }
 0xdf7   :  { %1871 = vmatpush1.msra.mxu1 %v1832_v19  ;;  %1914 = vmatprep.mubr.f32.mxu1 %v3147_v0  ;;  %v1993_v19 = vld [vmem:[#allocation17 + $0x10] sm:$0xff] }
 0xdf8   :  { %1872 = vmatprep.subr.mxu1 %v1831_v31  ;;  %v2027_v31 = vld [vmem:[#allocation17 + $0x120] sm:$0xff] }
 0xdf9   :  { %1873 = vmatpush1.msra.mxu1 %v1830_v40  ;;  %v2008_v40 = vld [vmem:[#allocation17 + $0x88] sm:$0xff] }
 0xdfa   :  { %1874 = vmatprep.subr.mxu1 %v1829_v41  ;;  %v1992_v41 = vld [vmem:[#allocation17 + $0x8] sm:$0xff] }
 0xdfb   :  { %1875 = vmatpush1.msra.mxu1 %v1828_v21  ;;  %v2026_v21 = vld [vmem:[#allocation17 + $0x118] sm:$0xff] }
 0xdfc   :  { %1876 = vmatprep.subr.mxu1 %v1827_v42  ;;  %v2007_v42 = vld [vmem:[#allocation17 + $0x80] sm:$0xff] }
 0xdfd   :  { %1877 = vmatpush1.msra.mxu1 %v1826_v22  ;;  %v1991_v22 = vld [vmem:[#allocation17] sm:$0xff] }
 0xdfe   :  { %1878 = vmatprep.subr.mxu1 %v1825_v28  ;;  %v2025_v28 = vld [vmem:[#allocation17 + $0x110] sm:$0xff] }
 0xdff   :  { %1879 = vmatpush1.msra.mxu1 %v1824_v43  ;;  %v2259_v43 = vld [vmem:[%s3915_s16 + $0x38] sm:$0xff] }
 0xe00   :  { %1880 = vmatprep.subr.mxu1 %v1823_v30  ;;  %v2024_v30 = vld [vmem:[#allocation17 + $0x108] sm:$0xff] }
 0xe01   :  { %1881 = vmatpush1.msra.mxu1 %v1822_v24  ;;  %v2023_v24 = vld [vmem:[#allocation17 + $0x100] sm:$0xff] }
 0xe02   :  { %2428 = vmatmul.mubr.msk.f32.vlgmr.msra.gmra.mxu1 %vm279_vm2, %v3434_v61  ;;  %2537 = vmatprep.subr.mxu1 %v2022_v44  ;;  %v2020_v61 = vld [vmem:[#allocation17 + $0xe8] sm:$0xff] }
 0xe03   :  { %1920 = vmatprep.mubr.f32.mxu1 %v3147_v0  ;;  %2538 = vmatpush3.msra.mxu1 %v2006_v45 }
 0xe04   :  { %2539 = vmatprep.subr.mxu1 %v2021_v46 }
 0xe05   :  { %2540 = vmatpush3.msra.mxu1 %v2005_v47  ;;  %v1838_v47 = vld [vmem:[%s3912_s13] sm:$0x3] }
 0xe06   :  { %2429 = vmatmul.mubr.msk.f32.gmra.mxu1 %vm279_vm2, %v3440_v62  ;;  %2541 = vmatprep.subr.mxu1 %v2020_v61  ;;  %v2003_v62 = vld [vmem:[#allocation17 + $0x60] sm:$0xff]  ;;  %v1843_v61 = vrot.slane %v1838_v47, %v870_v6  ;;  %v1847_v49 = vrot.slane %v1838_v47, %v874_v10 }
 0xe07   :  { %1926 = vmatprep.mubr.f32.mxu1 %v3147_v0  ;;  %2542 = vmatpush3.msra.mxu1 %v2004_v48 }
 0xe08   :  { %2543 = vmatprep.subr.mxu1 %v2019_v50 }
 0xe09   :  { %2544 = vmatpush3.msra.mxu1 %v2003_v62 }
 0xe0a   :  { %2430 = vmatmul.mubr.msk.f32.gmra.mxu1 %vm279_vm2, %v3445_v63  ;;  %v2018_v63 = vld [vmem:[#allocation17 + $0xd8] sm:$0xff] }
 0xe0b   :  { %1932 = vmatprep.mubr.f32.mxu1 %v3147_v0  ;;  %2545 = vmatprep.subr.mxu1 %v2018_v63  ;;  %v2002_v0 = vld [vmem:[#allocation17 + $0x58] sm:$0xff] }
 0xe0c   :  { %2546 = vmatpush3.msra.mxu1 %v2002_v0 }
 0xe0d   :  { %2547 = vmatprep.subr.mxu1 %v2017_v51 }
 0xe0e   :  { %2431 = vmatmul.mubr.msk.f32.gmra.mxu1 %vm279_vm2, %v3450_v1  ;;  %v2036_v1 = vld [vmem:[#allocation17 + $0x168] sm:$0xff] }
 0xe0f   :  { %2821 = vmatprep.subr.mxu0 %v2036_v1  ;;  %2548 = vmatpush3.msra.mxu1 %v2001_v53 }
 0xe10   :  { %2822 = vmatpush3.msra.mxu0 %v2036_v1  ;;  %2549 = vmatprep.subr.mxu1 %v2016_v55 }
 0xe11   :  { %2823 = vmatprep.subr.mxu0 %v2035_v54  ;;  %2550 = vmatpush3.msra.mxu1 %v2000_v56 }
 0xe12   :  { %2824 = vmatpush3.msra.mxu0 %v2035_v54  ;;  %2551 = vmatprep.subr.mxu1 %v2015_v58 }
 0xe13   :  { %2825 = vmatprep.subr.mxu0 %v2034_v57  ;;  %2552 = vmatpush3.msra.mxu1 %v1999_v59 }
 0xe14   :  { %2826 = vmatpush3.msra.mxu0 %v2034_v57  ;;  %2553 = vmatprep.subr.mxu1 %v2014_v7 }
 0xe15   :  { %2827 = vmatprep.subr.mxu0 %v2033_v2  ;;  %2554 = vmatpush3.msra.mxu1 %v1998_v9 }
 0xe16   :  { %2828 = vmatpush3.msra.mxu0 %v2033_v2  ;;  %2555 = vmatprep.subr.mxu1 %v2013_v12 }
 0xe17   :  { %2829 = vmatprep.subr.mxu0 %v2032_v11  ;;  %2556 = vmatpush3.msra.mxu1 %v1997_v14 }
 0xe18   :  { %2830 = vmatpush3.msra.mxu0 %v2032_v11  ;;  %2557 = vmatprep.subr.mxu1 %v2012_v17 }
 0xe19   :  { %2831 = vmatprep.subr.mxu0 %v2031_v16  ;;  %2558 = vmatpush3.msra.mxu1 %v1996_v23  ;;  %v2258_v23 = vld [vmem:[%s3915_s16 + $0x30] sm:$0xff] }
 0xe1a   :  { %2832 = vmatpush3.msra.mxu0 %v2031_v16  ;;  %2559 = vmatprep.subr.mxu1 %v2011_v8 }
 0xe1b   :  { %2833 = vmatprep.subr.mxu0 %v2030_v26  ;;  %2560 = vmatpush3.msra.mxu1 %v1995_v27 }
 0xe1c   :  { %2834 = vmatpush3.msra.mxu0 %v2030_v26  ;;  %2561 = vmatprep.subr.mxu1 %v2010_v35  ;;  %v2225_v26 = vpop.permute.xlu0 %2224 }
 0xe1d   :  { %2835 = vmatprep.subr.mxu0 %v2029_v33  ;;  %2562 = vmatpush3.msra.mxu1 %v1994_v36 }
 0xe1e   :  { %2836 = vmatpush3.msra.mxu0 %v2029_v33  ;;  %2563 = vmatprep.subr.mxu1 %v2009_v38 }
 0xe1f   :  { %2837 = vmatprep.subr.mxu0 %v2028_v20  ;;  %2564 = vmatpush3.msra.mxu1 %v1993_v19 }
 0xe20   :  { %2838 = vmatpush3.msra.mxu0 %v2028_v20  ;;  %2565 = vmatprep.subr.mxu1 %v2008_v40  ;;  %v2229_v47 = vpop.permute.xlu0 %2228 }
 0xe21   :  { %2839 = vmatprep.subr.mxu0 %v2027_v31  ;;  %2566 = vmatpush3.msra.mxu1 %v1992_v41  ;;  %v2227_v41 = vpop.permute.xlu1 %2226 }
 0xe22   :  { %2840 = vmatpush3.msra.mxu0 %v2027_v31  ;;  %2567 = vmatprep.subr.mxu1 %v2007_v42  ;;  %v2257_v31 = vld [vmem:[%s3915_s16 + $0x28] sm:$0xff] }
 0xe23   :  { %2841 = vmatprep.subr.mxu0 %v2026_v21  ;;  %2568 = vmatpush3.msra.mxu1 %v1991_v22  ;;  %v2216_v22 = vmul.f32 %v3470_v18, %v3467_v15  ;;  %v2255_v15 = vld [vmem:[%s3915_s16 + $0x18] sm:$0xff] }
 0xe24   :  { %2842 = vmatpush3.msra.mxu0 %v2026_v21  ;;  %2855 = vmatprep.subr.mxu1 %v2259_v43 }
 0xe25   :  { %2843 = vmatprep.subr.mxu0 %v2025_v28 }
 0xe26   :  { %2844 = vmatpush3.msra.mxu0 %v2025_v28 }
 0xe27   :  { %2845 = vmatprep.subr.mxu0 %v2024_v30 }
 0xe28   :  { %2846 = vmatpush3.msra.mxu0 %v2024_v30  ;;  %v2256_v30 = vld [vmem:[%s3915_s16 + $0x20] sm:$0xff] }
 0xe29   :  { %2847 = vmatprep.subr.mxu0 %v2023_v24 }
 0xe2a   :  { %2848 = vmatpush3.msra.mxu0 %v2023_v24 }
 0xeb2   :  { %v2813_v44 = vpop.f32.mrf.mxu1 }
 0xeb3   :  { %v1819_v53 = vmul.f32 %v2813_v44, %v3786_v60 }
 0xeb4   :  { %v1799_v45 = vpop.f32.mrf.mxu1 }
 0xeb5   :  { %v1818_v62 = vmul.f32 %v1799_v45, %v3794_v5  ;;  %v2236_v45 = vadd.f32 %v2225_v26, %v2216_v22 }
 0xeb6   :  { %v2816_v46 = vpop.f32.mrf.mxu1 }
 0xeb7   :  { %vm2240_vm3 = vcmp.ge.f32.partialorder %v2236_v45, 0.0 }
 0xeb8   :  { %v1809_v48 = vpop.f32.mrf.mxu1 }
 0xeb9   :  { %v1820_v4 = vmul.f32 %v1809_v48, %v3791_v3  ;;  %v1821_v3 = vmul.f32 %v2816_v46, %v3783_v13  ;;  %v2217_v46 = vmul.f32 %v3480_v29, %v3477_v25  ;;  %v2254_v25 = vld [vmem:[%s3915_s16 + $0x10] sm:$0xff] }
 0xec2   :  { %v1916_v50 = vpop.f32.mrf.mxu1 }
 0xec3   :  { %v1917_v32 = vadd.f32 %v1916_v50, %v1843_v61 }
 0xec4   :  { %v1918_v63 = vpop.f32.mrf.mxu1 }
 0xec5   :  { %v1939_v0 = vmul.f32 %v1917_v32, %v1818_v62  ;;  %v1919_v1 = vadd.f32 %v1918_v63, %v1847_v49  ;;  %v2231_v62 = vpop.permute.xlu1 %2230 }
 0xec6   :  { %v1922_v51 = vpop.f32.mrf.mxu1 }
 0xec7   :  { %v1943_v54 = vadd.f32 %v1939_v0, %v1919_v1  ;;  %v1923_v55 = vadd.f32 %v1922_v51, %v1843_v61  ;;  %v2244_v0 = vmul.f32 0.2, %v2236_v45 }
 0xec8   :  { %v1924_v56 = vpop.f32.mrf.mxu1 }
 0xec9   :  { %v1940_v57 = vmul.f32 %v1923_v55, %v1819_v53  ;;  %v1925_v58 = vadd.f32 %v1924_v56, %v1847_v49  ;;  %vm1947_vm14 = vcmp.ge.f32.partialorder %v1943_v54, 0.0  ;;  %v1951_v6 = vmul.f32 0.2, %v1943_v54 }
 0xeca   :  { %v1928_v59 = vpop.f32.mrf.mxu1  ;;  %v2248_v56 = vsel %vm2240_vm3, %v2236_v45, %v2244_v0 }
 0xecb   :  { %v1944_v10 = vadd.f32 %v1940_v57, %v1925_v58  ;;  %v1929_v2 = vadd.f32 %v1928_v59, %v1843_v61  ;;  %v1955_v5 = vsel %vm1947_vm14, %v1943_v54, %v1951_v6 }
 0xecc   :  { %v1930_v7 = vpop.f32.mrf.mxu1  ;;  %v1960_v9 = vrot.slane %v1955_v5, 1  ;;  %v1963_v11 = vrot.slane %v1955_v5, 7  ;;  %2110 = vmatprep.mubr.f32.mxu1 %v1955_v5 }
 0xecd   :  { %v1941_v12 = vmul.f32 %v1929_v2, %v1820_v4  ;;  %v1931_v14 = vadd.f32 %v1930_v7, %v1847_v49  ;;  %vm1948_vm15 = vcmp.ge.f32.partialorder %v1944_v10, 0.0  ;;  %v1952_v60 = vmul.f32 0.2, %v1944_v10 }
 0xece   :  { %v1934_v16 = vpop.f32.mrf.mxu1  ;;  %v1977_v17 = vsel %vm1019_vm8, %v1960_v9, %v1963_v11 }
 0xecf   :  { %v1945_v8 = vadd.f32 %v1941_v12, %v1931_v14  ;;  %v1935_v27 = vadd.f32 %v1934_v16, %v1843_v61  ;;  %2111 = vmatmul.mubr.f32.vlgmr.msra.gmra.mxu1 %v1977_v17  ;;  %v1956_v33 = vsel %vm1948_vm15, %v1944_v10, %v1952_v60  ;;  %v2218_v61 = vmul.f32 %v3490_v37, %v3487_v34  ;;  %v2253_v37 = vld [vmem:[%s3915_s16 + $0x8] sm:$0xff]  ;;  %v2432_v14 = vld [vmem:[%s3914_s15] ss:$0 sm:$0xff]  ;;  %s3150_s15 = smov [#allocation19]  }
 0xed0   :  { %v1936_v35 = vpop.f32.mrf.mxu1  ;;  %v1964_v36 = vrot.slane %v1956_v33, 7  ;;  %v1979_v20 = vrot.slane %v1956_v33, 1  ;;  %2115 = vmatprep.mubr.f32.mxu1 %v1956_v33  ;;  %2856 = vmatpush3.msra.mxu1 %v2259_v43  ;;  %v2219_v34 = vmul.f32 %v3621_v52, %v3497_v39  ;;  %v2252_v39 = vld [vmem:[%s3915_s16] sm:$0xff]  ;;  %s2370_s3 = sshll.u32 %s3150_s15, 4  ;;  %s2371_s3 = int_to_ptr.vmem [resolvable:$true] %s2370_s3 }
 0xed1   :  { %v1942_v38 = vmul.f32 %v1935_v27, %v1821_v3  ;;  %v1937_v19 = vadd.f32 %v1936_v35, %v1847_v49  ;;  %2857 = vmatprep.subr.mxu1 %v2258_v23  ;;  %vm1949_vm0 = vcmp.ge.f32.partialorder %v1945_v8, 0.0  ;;  %v1953_v40 = vmul.f32 0.2, %v1945_v8  ;;  %s3099_s24 = scalar_lea.vmem %s2371_s3, 512  ;;  %p3104_p9 = scmp.lt.s32.totalorder %s2371_s3, %s2371_s3 }
 0xed2   :  { %2858 = vmatpush3.msra.mxu1 %v2258_v23  ;;  %v1965_v13 = vsel %vm1019_vm8, %v1963_v11, %v1964_v36  ;;  %v1980_v21 = vsel %vm1036_vm10, %v1960_v9, %v1979_v20  ;;  %v1989_v42 = vsel %vm1036_vm10, %v1979_v20, %v1964_v36  ;;  %v2237_v49 = vadd.f32 %v2227_v41, %v2217_v46  ;;  %p3100_p8 = scmp.ne.s32.totalorder %s2371_s3, %s3099_s24  ;;  %p3105_p10 = scmp.lt.s32.totalorder %s3099_s24, %s3099_s24 }
 0xed3   :  { %v1946_v28 = vadd.f32 %v1942_v38, %v1937_v19  ;;  %2116 = vmatmul.mubr.f32.gmra.mxu1 %v1965_v13  ;;  %2849 = vmatprep.mubr.f32.mxu0 %v1980_v21  ;;  %v1957_v43 = vsel %vm1949_vm0, %v1945_v8, %v1953_v40  ;;  %v2238_v29 = vadd.f32 %v2229_v47, %v2218_v61 }
 0xed4   :  { %2859 = vmatprep.subr.mxu1 %v2257_v31  ;;  %v1969_v24 = vrot.slane %v1957_v43, 1  ;;  %v1972_v44 = vrot.slane %v1957_v43, 7  ;;  %2120 = vmatprep.mubr.f32.mxu1 %v1957_v43  ;;  %v2245_v54 = vmul.f32 0.2, %v2237_v49  ;;  %v2239_v55 = vadd.f32 %v2231_v62, %v2219_v34  ;;  %p3106_p11 = por %p3105_p10, %p3104_p9 }
 0xed5   :  { %2850 = vmatmul.mubr.f32.vlgmr.msra.gmra.mxu0 %v1989_v42  ;;  %2860 = vmatpush3.msra.mxu1 %v2257_v31  ;;  %vm1950_vm1 = vcmp.ge.f32.partialorder %v1946_v28, 0.0  ;;  %v1954_v18 = vmul.f32 0.2, %v1946_v28  ;;  %vm2241_vm4 = vcmp.ge.f32.partialorder %v2237_v49, 0.0  ;;  %v2246_v52 = vmul.f32 0.2, %v2238_v29 }
 0xed6   :  { %2861 = vmatprep.subr.mxu1 %v2256_v30  ;;  %v1978_v48 = vsel %vm1019_vm8, %v1969_v24, %v1972_v44  ;;  %vm2242_vm5 = vcmp.ge.f32.partialorder %v2238_v29, 0.0  ;;  %v2249_v57 = vsel %vm2241_vm4, %v2237_v49, %v2245_v54  ;;  %v2247_v58 = vmul.f32 0.2, %v2239_v55  ;;  %p3107_p12 = pnand %p3106_p11, %p3100_p8 }
 0xed7   :  { %2862 = vmatpush3.msra.mxu1 %v2256_v30  ;;  %v1958_v50 = vsel %vm1950_vm1, %v1946_v28, %v1954_v18  ;;  %vm2243_vm6 = vcmp.ge.f32.partialorder %v2239_v55, 0.0  ;;  %v2250_v6 = vsel %vm2242_vm5, %v2238_v29, %v2246_v52 }
 0xed8   :  { %2121 = vmatmul.mubr.f32.gmra.mxu1 %v1978_v48  ;;  %2863 = vmatprep.subr.mxu1 %v2255_v15  ;;  %v1973_v32 = vrot.slane %v1958_v50, 7  ;;  %v1984_v63 = vrot.slane %v1958_v50, 1  ;;  %v2251_v59 = vsel %vm2243_vm6, %v2239_v55, %v2247_v58 }
 0xed9   :  { %2125 = vmatprep.mubr.f32.mxu1 %v1958_v50  ;;  %2864 = vmatpush3.msra.mxu1 %v2255_v15 }
 0xeda   :  { %2865 = vmatprep.subr.mxu1 %v2254_v25  ;;  %v1974_v1 = vsel %vm1019_vm8, %v1972_v44, %v1973_v32  ;;  %v1985_v51 = vsel %vm1036_vm10, %v1969_v24, %v1984_v63  ;;  %v1990_v53 = vsel %vm1036_vm10, %v1984_v63, %v1973_v32 }
 0xedb   :  { %2866 = vmatpush3.msra.mxu1 %v2254_v25  ;;  %2852 = vmatprep.mubr.f32.mxu0 %v1985_v51 }
 0xedc   :  { %2126 = vmatmul.mubr.f32.gmra.mxu1 %v1974_v1  ;;  %2867 = vmatprep.subr.mxu1 %v2253_v37 }
 0xedd   :  { %2853 = vmatmul.mubr.f32.gmra.mxu0 %v1990_v53  ;;  %2868 = vmatpush3.msra.mxu1 %v2253_v37 }
 0xede   :  { %2871 = vmatprep.mubr.msk.f32.mxu1 %vm279_vm2, %v2248_v56  ;;  %2869 = vmatprep.subr.mxu1 %v2252_v39 }
 0xedf   :  { %2870 = vmatpush3.msra.mxu1 %v2252_v39 }
 0xee0   :  { %2872 = vmatmul.mubr.msk.f32.vlgmr.msra.gmra.mxu1 %vm279_vm2, %v2249_v57 }
 0xee1   :  { %2874 = vmatprep.mubr.msk.f32.mxu1 %vm279_vm2, %v2250_v6 }
 0xee4   :  { %2875 = vmatmul.mubr.msk.f32.gmra.mxu1 %vm279_vm2, %v2251_v59 }
 0xf8f   :  { %v2569_v4 = vpop.f32.mrf.mxu1 }
 0xf91   :  { %v2570_v10 = vpop.f32.mrf.mxu1 }
 0xf92   :  { %v2571_v12 = vadd.f32 %v2570_v10, %v2569_v4 }
 0xf93   :  { %v2572_v2 = vpop.f32.mrf.mxu1 }
 0xf94   :  { %v2113_v26 = vadd.f32 %v2571_v12, %v2432_v14 }
 0xf95   :  { %v2573_v5 = vpop.f32.mrf.mxu1  ;;  %v2851_v9 = vpop.f32.mrf.mxu0 }
 0xf96   :  { %v2574_v7 = vadd.f32 %v2573_v5, %v2572_v2 }
 0xf97   :  { %v2197_v17 = vpop.f32.mrf.mxu0 }
 0xf98   :  { %v2575_v11 = vpop.f32.mrf.mxu1  ;;  %v2118_v16 = vadd.f32 %v2574_v7, %v2432_v14  ;;  %v2198_v20 = vadd.f32 %v2197_v17, %v2113_v26 }
 0xf9a   :  { %v2576_v60 = vpop.f32.mrf.mxu1  ;;  %v2203_v35 = vadd.f32 %v2851_v9, %v2118_v16 }
 0xf9b   :  { %v2577_v3 = vadd.f32 %v2576_v60, %v2575_v11 }
 0xf9c   :  { %v2578_v23 = vpop.f32.mrf.mxu1 }
 0xf9d   :  { %v2854_v8 = vpop.f32.mrf.mxu0  ;;  %v2123_v19 = vadd.f32 %v2577_v3, %v2432_v14 }
 0xf9e   :  { %v2579_v27 = vpop.f32.mrf.mxu1 }
 0xf9f   :  { %v2580_v33 = vadd.f32 %v2579_v27, %v2578_v23  ;;  %v2207_v40 = vpop.f32.mrf.mxu0 }
 0xfa0   :  { %v2873_v36 = vpop.f32.mrf.mxu1  ;;  %v2208_v22 = vadd.f32 %v2207_v40, %v2123_v19 }
 0xfa1   :  { %v2128_v38 = vadd.f32 %v2580_v33, %v2432_v14  ;;  %v2358_v31 = vadd.f32 %v2873_v36, %v2203_v35 }
 0xfa2   :  { %v2338_v41 = vpop.f32.mrf.mxu1 }
 0xfa3   :  { %2362 = vst [vmem:[#allocation19 + $0x8] sm:$0xff] %v2358_v31  ;;  %v2357_v13 = vadd.f32 %v2338_v41, %v2198_v20  ;;  %v2213_v21 = vadd.f32 %v2854_v8, %v2128_v38 }
 0xfa4   :  { %v2876_v42 = vpop.f32.mrf.mxu1 }
 0xfa5   :  { %2361 = vst [vmem:[#allocation19] sm:$0xff] %v2357_v13  ;;  %v2360_v28 = vadd.f32 %v2876_v42, %v2213_v21 }
 0xfa6   :  { %v2348_v43 = vpop.f32.mrf.mxu1 }
 0xfa7   :  { %2364 = vst [vmem:[#allocation19 + $0x18] sm:$0xff] %v2360_v28  ;;  %v2359_v30 = vadd.f32 %v2348_v43, %v2208_v22 }
 0xfa9   :  { %2363 = vst [vmem:[#allocation19 + $0x10] sm:$0xff] %v2359_v30 }
 0xfaa   :  { %3110 = shalt.err (!%p3107_p12)
}
 0xfab   :  { %2376 = dma.vmem_to_hbm [thread:$0]  %s2371_s3, 512, %s3916_s17, [#allocation4], %s3135_s29, %s3135_s29, %s3136_s0  }
 0xfac   :  { %3131 = dma.done.wait [#allocation4], 512  }
 0xfad   :  { %3132 = vsyncadd [#allocation4], 4294966784 }
 0xfae   :  { %2380 = vsyncpa [#allocation3], 1 }
 0xfaf   :  { %2381 = vsyncpa [#allocation6], 1 }
 0xfb0   :  { %2382 = vsyncpa [#allocation9], 1 }
 0xfb1   :  { %2383 = vsyncpa [#allocation12], 1 }
 0xfb2   :  { %2384 = vsyncpa [#allocation15], 1 }
 0xfb3   :  { %2385 = vsyncpa [#allocation18], 1 }
 0xfb4   :  { %2386 = vsyncpa [#allocation4], 1 }

</bundles_post_ra>
